<compile_context>
chip_gen: v5e
topology: v5e:2x2
jax: 0.10.0
libtpu: 0.0.40
codegen_flags: <defaults>
</compile_context>

<pallas_src>
import functools

import jax
import jax.numpy as jnp
from jax.experimental import pallas as pl
from jax.experimental.pallas import tpu as pltpu


# ---------------------------------------------------------------------------
# Fused Pallas kernel: expand 1x1 -> depthwise 3x3 -> project 1x1 (+ residual)
# ---------------------------------------------------------------------------
def _fused_kernel(x_ref, w1_ref, b1_ref, wdw_ref, b2_ref, w3_ref, b3_ref,
                  o_ref, h1p_ref, *, H, W, Ho, Wo, stride, use_res):
    """One batch image per grid step.

    x_ref   : (1, H*W, Cin)        input rows (channels on lanes)
    w1_ref  : (Cin, mid)           1x1 expand weight, BN scale folded in
    b1_ref  : (1, mid)             expand BN bias
    wdw_ref : (3, 3, mid)          depthwise weight, BN scale folded in
    b2_ref  : (1, 1, mid)          depthwise BN bias
    w3_ref  : (mid, Cout)          1x1 project weight, BN scale folded in
    b3_ref  : (1, Cout)            project BN bias
    o_ref   : (1, Ho*Wo, Cout)     output rows
    h1p_ref : (H+2, W+16, mid) f32 VMEM scratch, zero halo around the interior
                                   which is stored at rows [1:H+1], cols [8:8+W]
                                   (sublane-aligned store offset).
    """
    mid = w1_ref.shape[1]

    # ---- Stage 1: 1x1 expand (MXU) + bias + ReLU -> padded VMEM scratch ----
    x2d = x_ref[0]                                            # (H*W, Cin)
    h1 = jnp.dot(x2d, w1_ref[...], preferred_element_type=jnp.float32)
    h1 = jnp.maximum(h1 + b1_ref[...], 0.0)                   # (H*W, mid) f32

    h1p_ref[...] = jnp.zeros_like(h1p_ref)                    # zero halo (VMEM only)
    h1p_ref[1:H + 1, 8:8 + W, :] = h1.reshape(H, W, mid)      # aligned interior store

    # ---- Stage 2: 3x3 depthwise (VPU, 9 shifted ref loads) + bias + ReLU ----
    wdw = wdw_ref[...]                                        # (3, 3, mid), tiny
    acc = jnp.zeros((Ho, Wo, mid), jnp.float32)
    for kh in range(3):
        for kw in range(3):
            if stride == 1:
                win = h1p_ref[kh:kh + Ho, 7 + kw:7 + kw + Wo, :]
            else:
                # strided ref load straight from the padded scratch
                win = h1p_ref[pl.ds(kh, Ho, stride=stride),
                              pl.ds(7 + kw, Wo, stride=stride), :]
            acc = acc + win * wdw[kh, kw, :]
    h2 = jnp.maximum(acc + b2_ref[...], 0.0)                  # (Ho, Wo, mid) f32

    # ---- Stage 3: 1x1 project (MXU) + bias (+ fused residual) ----
    y = jnp.dot(h2.reshape(Ho * Wo, mid).astype(w3_ref.dtype), w3_ref[...],
                preferred_element_type=jnp.float32)
    y = y + b3_ref[...]
    if use_res:
        y = y + x2d.astype(jnp.float32)                       # stride==1, Cin==Cout
    o_ref[0] = y.astype(o_ref.dtype)


# ---------------------------------------------------------------------------
# Wrapper: NCHW in/out (PyTorch convention), NHWC + flattened rows inside.
# ---------------------------------------------------------------------------
def inverted_residual_forward(x_nchw, params, *, stride, use_res_connect,
                              compute_dtype=jnp.float32):
    N, Cin, H, W = x_nchw.shape
    # NCHW -> NHWC -> (N, H*W, Cin): channels on the 128-lane axis.
    x_rows = jnp.transpose(x_nchw, (0, 2, 3, 1)).reshape(N, H * W, Cin)
    x_in = x_rows.astype(compute_dtype)

    # Fold BN scales into the conv weights once at trace time (dot + bias in kernel).
    w1f = (params["w1"] * params["s1"][None, :]).astype(compute_dtype)
    wdwf = params["wdw"] * params["s2"][None, None, :]            # keep f32 (VPU path)
    w3f = (params["w3"] * params["s3"][None, :]).astype(compute_dtype)
    b1 = params["b1"].reshape(1, -1).astype(jnp.float32)
    b2 = params["b2"].reshape(1, 1, -1).astype(jnp.float32)
    b3 = params["b3"].reshape(1, -1).astype(jnp.float32)

    mid = w1f.shape[1]
    Cout = w3f.shape[1]
    Ho = (H + 2 - 3) // stride + 1
    Wo = (W + 2 - 3) // stride + 1

    flops = 2 * N * (H * W * Cin * mid + Ho * Wo * mid * 9 + Ho * Wo * mid * Cout)
    bytes_accessed = (x_in.size * x_in.dtype.itemsize
                      + N * Ho * Wo * Cout * x_nchw.dtype.itemsize
                      + w1f.size * w1f.dtype.itemsize
                      + w3f.size * w3f.dtype.itemsize
                      + wdwf.size * 4 + (b1.size + b2.size + b3.size) * 4)

    kern = functools.partial(_fused_kernel, H=H, W=W, Ho=Ho, Wo=Wo,
                             stride=stride, use_res=use_res_connect)

    # TODO(synk): for real MobileNetV2 spatial sizes on v7x, add an H-stripe grid
    # axis (per-stripe halo DMA) so both TensorCores get many parallel steps and
    # the per-step scratch stays well under the 64 MiB VMEM budget.
    out = pl.pallas_call(
        kern,
        out_shape=jax.ShapeDtypeStruct((N, Ho * Wo, Cout), x_nchw.dtype),
        grid_spec=pltpu.PrefetchScalarGridSpec(
            num_scalar_prefetch=0,
            grid=(N,),
            in_specs=[
                pl.BlockSpec((1, H * W, Cin), lambda n: (n, 0, 0)),
                pl.BlockSpec((Cin, mid), lambda n: (0, 0)),
                pl.BlockSpec((1, mid), lambda n: (0, 0)),
                pl.BlockSpec((3, 3, mid), lambda n: (0, 0, 0)),
                pl.BlockSpec((1, 1, mid), lambda n: (0, 0, 0)),
                pl.BlockSpec((mid, Cout), lambda n: (0, 0)),
                pl.BlockSpec((1, Cout), lambda n: (0, 0)),
            ],
            out_specs=pl.BlockSpec((1, Ho * Wo, Cout), lambda n: (n, 0, 0)),
            scratch_shapes=[pltpu.VMEM((H + 2, W + 16, mid), jnp.float32)],
        ),
        compiler_params=pltpu.CompilerParams(
            dimension_semantics=("parallel",)),
        cost_estimate=pl.CostEstimate(flops=flops, transcendentals=0,
                                      bytes_accessed=bytes_accessed),
    )(x_in, w1f, b1, wdwf, b2, w3f, b3)

    out = out.reshape(N, Ho, Wo, Cout)
    return jnp.transpose(out, (0, 3, 1, 2))   # -> NCHW


# ---------------------------------------------------------------------------
# Deterministic parameter construction (BN folded into scale/bias, eval mode)
# ---------------------------------------------------------------------------
def make_params(key, inp, oup, expand_ratio, eps=1e-5):
    mid = inp * expand_ratio
    ks = jax.random.split(key, 15)

    def bn(kg, kb, km, kv, c):
        gamma = 1.0 + 0.1 * jax.random.normal(kg, (c,), jnp.float32)
        beta = 0.1 * jax.random.normal(kb, (c,), jnp.float32)
        mean = 0.1 * jax.random.normal(km, (c,), jnp.float32)
        var = jnp.abs(jax.random.normal(kv, (c,), jnp.float32)) + 0.5
        scale = gamma / jnp.sqrt(var + eps)
        bias = beta - mean * scale
        return scale, bias

    w1 = 0.1 * jax.random.normal(ks[0], (inp, mid), jnp.float32)    # (Cin, Cmid)
    wdw = 0.1 * jax.random.normal(ks[1], (3, 3, mid), jnp.float32)  # (kh, kw, Cmid)
    w3 = 0.1 * jax.random.normal(ks[2], (mid, oup), jnp.float32)    # (Cmid, Cout)
    s1, b1 = bn(ks[3], ks[4], ks[5], ks[6], mid)
    s2, b2 = bn(ks[7], ks[8], ks[9], ks[10], mid)
    s3, b3 = bn(ks[11], ks[12], ks[13], ks[14], oup)
    return dict(w1=w1, wdw=wdw, w3=w3, s1=s1, b1=b1, s2=s2, b2=b2, s3=s3, b3=b3)


# ---------------------------------------------------------------------------
# Pure-JAX reference for correctness checking
# ---------------------------------------------------------------------------
def reference_forward(x_nchw, params, *, stride, use_res_connect):
    x = jnp.transpose(x_nchw, (0, 2, 3, 1))
    h = jnp.einsum("nhwc,cd->nhwd", x, params["w1"]) * params["s1"] + params["b1"]
    h = jnp.maximum(h, 0.0)
    mid = h.shape[-1]
    rhs = params["wdw"].reshape(3, 3, 1, mid)
    h = jax.lax.conv_general_dilated(
        h, rhs, (stride, stride), ((1, 1), (1, 1)),
        dimension_numbers=("NHWC", "HWIO", "NHWC"), feature_group_count=mid)
    h = jnp.maximum(h * params["s2"] + params["b2"], 0.0)
    out = jnp.einsum("nhwc,cd->nhwd", h, params["w3"]) * params["s3"] + params["b3"]
    if use_res_connect:
        out = out + x
    return jnp.transpose(out, (0, 3, 1, 2))


if __name__ == "__main__":
    key = jax.random.PRNGKey(0)
    kx, kp, kp2 = jax.random.split(key, 3)

    # Config A: inp=oup=8, stride=1, expand_ratio=4 -> residual connection used.
    inp, oup, stride, expand_ratio = 8, 8, 1, 4
    use_res = (stride == 1) and (inp == oup)
    x = jax.random.normal(kx, (2, inp, 16, 16), jnp.float32)   # NCHW, like PyTorch
    params = make_params(kp, inp, oup, expand_ratio)

    fwd = jax.jit(functools.partial(inverted_residual_forward,
                                    stride=stride, use_res_connect=use_res))
    out = jax.block_until_ready(fwd(x, params))
    ref = jax.block_until_ready(
        reference_forward(x, params, stride=stride, use_res_connect=use_res))
    assert out.shape == (2, oup, 16, 16)
    assert jnp.allclose(out, ref, rtol=1e-4, atol=1e-4), "f32 fused kernel mismatch"

    # Config B: projection to a different channel count -> no residual branch.
    oup_b = 16
    params_b = make_params(kp2, inp, oup_b, expand_ratio)
    out_b = jax.block_until_ready(
        inverted_residual_forward(x, params_b, stride=1, use_res_connect=False))
    ref_b = reference_forward(x, params_b, stride=1, use_res_connect=False)
    assert out_b.shape == (2, oup_b, 16, 16)
    assert jnp.allclose(out_b, ref_b, rtol=1e-4, atol=1e-4), "no-residual mismatch"

    # bf16 activations / 1x1 weights with f32 accumulation (v6e/v7x fast path).
    out_bf16 = jax.block_until_ready(
        inverted_residual_forward(x, params, stride=stride, use_res_connect=use_res,
                                  compute_dtype=jnp.bfloat16))
    assert out_bf16.shape == (2, oup, 16, 16)
    assert jnp.allclose(out_bf16, ref, rtol=5e-2, atol=5e-2), "bf16 fused kernel mismatch"

    print("KERNEL_OK")
</pallas_src>

<mosaic_0001>
module attributes {stable_mosaic.version = 11 : i64} {
  func.func @_fused_kernel(%arg0: i32, %arg1: memref<1x256x8xf32, #tpu.memory_space<vmem>>, %arg2: memref<8x32xf32, #tpu.memory_space<vmem>>, %arg3: memref<1x32xf32, #tpu.memory_space<vmem>>, %arg4: memref<3x3x32xf32, #tpu.memory_space<vmem>>, %arg5: memref<1x1x32xf32, #tpu.memory_space<vmem>>, %arg6: memref<32x8xf32, #tpu.memory_space<vmem>>, %arg7: memref<1x8xf32, #tpu.memory_space<vmem>>, %arg8: memref<1x256x8xf32, #tpu.memory_space<vmem>>, %arg9: memref<18x32x32xf32, #tpu.memory_space<vmem>>) attributes {dimension_semantics = [#tpu.dimension_semantics<parallel>], iteration_bounds = array<i64: 2>, scalar_prefetch = 0 : i64, scratch_operands = 1 : i64, tpu.core_type = #tpu.core_type<tc>, window_params = [{transform_indices = @transform_0, window_bounds = array<i64: 1, 256, 8>}, {pipeline_mode = #tpu.pipeline_mode<synchronous>, transform_indices = @transform_1, window_bounds = array<i64: 8, 32>}, {pipeline_mode = #tpu.pipeline_mode<synchronous>, transform_indices = @transform_2, window_bounds = array<i64: 1, 32>}, {pipeline_mode = #tpu.pipeline_mode<synchronous>, transform_indices = @transform_3, window_bounds = array<i64: 3, 3, 32>}, {pipeline_mode = #tpu.pipeline_mode<synchronous>, transform_indices = @transform_4, window_bounds = array<i64: 1, 1, 32>}, {pipeline_mode = #tpu.pipeline_mode<synchronous>, transform_indices = @transform_5, window_bounds = array<i64: 32, 8>}, {pipeline_mode = #tpu.pipeline_mode<synchronous>, transform_indices = @transform_6, window_bounds = array<i64: 1, 8>}, {transform_indices = @transform_7, window_bounds = array<i64: 1, 256, 8>}]} {
    %c0 = arith.constant 0 : index
    %c0_0 = arith.constant 0 : index
    %c0_1 = arith.constant 0 : index
    %0 = vector.load %arg1[%c0, %c0_0, %c0_1] : memref<1x256x8xf32, #tpu.memory_space<vmem>>, vector<1x256x8xf32>
    %1 = vector.shape_cast %0 : vector<1x256x8xf32> to vector<256x8xf32>
    %c0_2 = arith.constant 0 : index
    %c0_3 = arith.constant 0 : index
    %2 = vector.load %arg2[%c0_2, %c0_3] : memref<8x32xf32, #tpu.memory_space<vmem>>, vector<8x32xf32>
    %cst = arith.constant dense<0.000000e+00> : vector<256x32xf32>
    %3 = tpu.matmul %1, %2, %cst {dimension_numbers = #tpu.dot_dimension_numbers<[1], [0], [0], [1], [0, 0, 1, 1], [], []>} : vector<256x8xf32>, vector<8x32xf32>, vector<256x32xf32> -> vector<256x32xf32>
    %c0_4 = arith.constant 0 : index
    %c0_5 = arith.constant 0 : index
    %4 = vector.load %arg3[%c0_4, %c0_5] : memref<1x32xf32, #tpu.memory_space<vmem>>, vector<1x32xf32>
    %5 = vector.broadcast %4 : vector<1x32xf32> to vector<256x32xf32>
    %6 = arith.addf %3, %5 : vector<256x32xf32>
    %cst_6 = arith.constant 0.000000e+00 : f32
    %7 = vector.broadcast %cst_6 : f32 to vector<256x32xf32>
    %8 = arith.maximumf %6, %7 : vector<256x32xf32>
    %cst_7 = arith.constant 0.000000e+00 : f32
    %9 = vector.broadcast %cst_7 : f32 to vector<18x32x32xf32>
    %c0_8 = arith.constant 0 : index
    %c0_9 = arith.constant 0 : index
    %c0_10 = arith.constant 0 : index
    %10 = vector.load %arg9[%c0_8, %c0_9, %c0_10] : memref<18x32x32xf32, #tpu.memory_space<vmem>>, vector<18x32x32xf32>
    tpu.vector_store %arg9[%c0_8, %c0_9, %c0_10], %9 {strides = array<i32>} : memref<18x32x32xf32, #tpu.memory_space<vmem>>, vector<18x32x32xf32>,
    %11 = vector.shape_cast %8 : vector<256x32xf32> to vector<16x16x32xf32>
    %c1 = arith.constant 1 : index
    %c8 = arith.constant 8 : index
    %c0_11 = arith.constant 0 : index
    %12 = vector.load %arg9[%c1, %c8, %c0_11] : memref<18x32x32xf32, #tpu.memory_space<vmem>>, vector<16x16x32xf32>
    tpu.vector_store %arg9[%c1, %c8, %c0_11], %11 {strides = array<i32>} : memref<18x32x32xf32, #tpu.memory_space<vmem>>, vector<16x16x32xf32>,
    %c0_12 = arith.constant 0 : index
    %c0_13 = arith.constant 0 : index
    %c0_14 = arith.constant 0 : index
    %13 = vector.load %arg4[%c0_12, %c0_13, %c0_14] : memref<3x3x32xf32, #tpu.memory_space<vmem>>, vector<3x3x32xf32>
    %cst_15 = arith.constant 0.000000e+00 : f32
    %14 = vector.broadcast %cst_15 : f32 to vector<16x16x32xf32>
    %c0_16 = arith.constant 0 : index
    %c7 = arith.constant 7 : index
    %c0_17 = arith.constant 0 : index
    %15 = vector.load %arg9[%c0_16, %c7, %c0_17] : memref<18x32x32xf32, #tpu.memory_space<vmem>>, vector<16x16x32xf32>
    %16 = vector.extract_strided_slice %13 {offsets = [0, 0, 0], sizes = [1, 1, 32], strides = [1, 1, 1]} : vector<3x3x32xf32> to vector<1x1x32xf32>
    %17 = vector.shape_cast %16 : vector<1x1x32xf32> to vector<32xf32>
    %18 = vector.shape_cast %17 : vector<32xf32> to vector<1x1x32xf32>
    %19 = vector.broadcast %18 : vector<1x1x32xf32> to vector<16x16x32xf32>
    %20 = arith.mulf %15, %19 : vector<16x16x32xf32>
    %21 = arith.addf %14, %20 : vector<16x16x32xf32>
    %c0_18 = arith.constant 0 : index
    %c8_19 = arith.constant 8 : index
    %c0_20 = arith.constant 0 : index
    %22 = vector.load %arg9[%c0_18, %c8_19, %c0_20] : memref<18x32x32xf32, #tpu.memory_space<vmem>>, vector<16x16x32xf32>
    %23 = vector.extract_strided_slice %13 {offsets = [0, 1, 0], sizes = [1, 1, 32], strides = [1, 1, 1]} : vector<3x3x32xf32> to vector<1x1x32xf32>
    %24 = vector.shape_cast %23 : vector<1x1x32xf32> to vector<32xf32>
    %25 = vector.shape_cast %24 : vector<32xf32> to vector<1x1x32xf32>
    %26 = vector.broadcast %25 : vector<1x1x32xf32> to vector<16x16x32xf32>
    %27 = arith.mulf %22, %26 : vector<16x16x32xf32>
    %28 = arith.addf %21, %27 : vector<16x16x32xf32>
    %c0_21 = arith.constant 0 : index
    %c9 = arith.constant 9 : index
    %c0_22 = arith.constant 0 : index
    %29 = vector.load %arg9[%c0_21, %c9, %c0_22] : memref<18x32x32xf32, #tpu.memory_space<vmem>>, vector<16x16x32xf32>
    %30 = vector.extract_strided_slice %13 {offsets = [0, 2, 0], sizes = [1, 1, 32], strides = [1, 1, 1]} : vector<3x3x32xf32> to vector<1x1x32xf32>
    %31 = vector.shape_cast %30 : vector<1x1x32xf32> to vector<32xf32>
    %32 = vector.shape_cast %31 : vector<32xf32> to vector<1x1x32xf32>
    %33 = vector.broadcast %32 : vector<1x1x32xf32> to vector<16x16x32xf32>
    %34 = arith.mulf %29, %33 : vector<16x16x32xf32>
    %35 = arith.addf %28, %34 : vector<16x16x32xf32>
    %c1_23 = arith.constant 1 : index
    %c7_24 = arith.constant 7 : index
    %c0_25 = arith.constant 0 : index
    %36 = vector.load %arg9[%c1_23, %c7_24, %c0_25] : memref<18x32x32xf32, #tpu.memory_space<vmem>>, vector<16x16x32xf32>
    %37 = vector.extract_strided_slice %13 {offsets = [1, 0, 0], sizes = [1, 1, 32], strides = [1, 1, 1]} : vector<3x3x32xf32> to vector<1x1x32xf32>
    %38 = vector.shape_cast %37 : vector<1x1x32xf32> to vector<32xf32>
    %39 = vector.shape_cast %38 : vector<32xf32> to vector<1x1x32xf32>
    %40 = vector.broadcast %39 : vector<1x1x32xf32> to vector<16x16x32xf32>
    %41 = arith.mulf %36, %40 : vector<16x16x32xf32>
    %42 = arith.addf %35, %41 : vector<16x16x32xf32>
    %c1_26 = arith.constant 1 : index
    %c8_27 = arith.constant 8 : index
    %c0_28 = arith.constant 0 : index
    %43 = vector.load %arg9[%c1_26, %c8_27, %c0_28] : memref<18x32x32xf32, #tpu.memory_space<vmem>>, vector<16x16x32xf32>
    %44 = vector.extract_strided_slice %13 {offsets = [1, 1, 0], sizes = [1, 1, 32], strides = [1, 1, 1]} : vector<3x3x32xf32> to vector<1x1x32xf32>
    %45 = vector.shape_cast %44 : vector<1x1x32xf32> to vector<32xf32>
    %46 = vector.shape_cast %45 : vector<32xf32> to vector<1x1x32xf32>
    %47 = vector.broadcast %46 : vector<1x1x32xf32> to vector<16x16x32xf32>
    %48 = arith.mulf %43, %47 : vector<16x16x32xf32>
    %49 = arith.addf %42, %48 : vector<16x16x32xf32>
    %c1_29 = arith.constant 1 : index
    %c9_30 = arith.constant 9 : index
    %c0_31 = arith.constant 0 : index
    %50 = vector.load %arg9[%c1_29, %c9_30, %c0_31] : memref<18x32x32xf32, #tpu.memory_space<vmem>>, vector<16x16x32xf32>
    %51 = vector.extract_strided_slice %13 {offsets = [1, 2, 0], sizes = [1, 1, 32], strides = [1, 1, 1]} : vector<3x3x32xf32> to vector<1x1x32xf32>
    %52 = vector.shape_cast %51 : vector<1x1x32xf32> to vector<32xf32>
    %53 = vector.shape_cast %52 : vector<32xf32> to vector<1x1x32xf32>
    %54 = vector.broadcast %53 : vector<1x1x32xf32> to vector<16x16x32xf32>
    %55 = arith.mulf %50, %54 : vector<16x16x32xf32>
    %56 = arith.addf %49, %55 : vector<16x16x32xf32>
    %c2 = arith.constant 2 : index
    %c7_32 = arith.constant 7 : index
    %c0_33 = arith.constant 0 : index
    %57 = vector.load %arg9[%c2, %c7_32, %c0_33] : memref<18x32x32xf32, #tpu.memory_space<vmem>>, vector<16x16x32xf32>
    %58 = vector.extract_strided_slice %13 {offsets = [2, 0, 0], sizes = [1, 1, 32], strides = [1, 1, 1]} : vector<3x3x32xf32> to vector<1x1x32xf32>
    %59 = vector.shape_cast %58 : vector<1x1x32xf32> to vector<32xf32>
    %60 = vector.shape_cast %59 : vector<32xf32> to vector<1x1x32xf32>
    %61 = vector.broadcast %60 : vector<1x1x32xf32> to vector<16x16x32xf32>
    %62 = arith.mulf %57, %61 : vector<16x16x32xf32>
    %63 = arith.addf %56, %62 : vector<16x16x32xf32>
    %c2_34 = arith.constant 2 : index
    %c8_35 = arith.constant 8 : index
    %c0_36 = arith.constant 0 : index
    %64 = vector.load %arg9[%c2_34, %c8_35, %c0_36] : memref<18x32x32xf32, #tpu.memory_space<vmem>>, vector<16x16x32xf32>
    %65 = vector.extract_strided_slice %13 {offsets = [2, 1, 0], sizes = [1, 1, 32], strides = [1, 1, 1]} : vector<3x3x32xf32> to vector<1x1x32xf32>
    %66 = vector.shape_cast %65 : vector<1x1x32xf32> to vector<32xf32>
    %67 = vector.shape_cast %66 : vector<32xf32> to vector<1x1x32xf32>
    %68 = vector.broadcast %67 : vector<1x1x32xf32> to vector<16x16x32xf32>
    %69 = arith.mulf %64, %68 : vector<16x16x32xf32>
    %70 = arith.addf %63, %69 : vector<16x16x32xf32>
    %c2_37 = arith.constant 2 : index
    %c9_38 = arith.constant 9 : index
    %c0_39 = arith.constant 0 : index
    %71 = vector.load %arg9[%c2_37, %c9_38, %c0_39] : memref<18x32x32xf32, #tpu.memory_space<vmem>>, vector<16x16x32xf32>
    %72 = vector.extract_strided_slice %13 {offsets = [2, 2, 0], sizes = [1, 1, 32], strides = [1, 1, 1]} : vector<3x3x32xf32> to vector<1x1x32xf32>
    %73 = vector.shape_cast %72 : vector<1x1x32xf32> to vector<32xf32>
    %74 = vector.shape_cast %73 : vector<32xf32> to vector<1x1x32xf32>
    %75 = vector.broadcast %74 : vector<1x1x32xf32> to vector<16x16x32xf32>
    %76 = arith.mulf %71, %75 : vector<16x16x32xf32>
    %77 = arith.addf %70, %76 : vector<16x16x32xf32>
    %c0_40 = arith.constant 0 : index
    %c0_41 = arith.constant 0 : index
    %c0_42 = arith.constant 0 : index
    %78 = vector.load %arg5[%c0_40, %c0_41, %c0_42] : memref<1x1x32xf32, #tpu.memory_space<vmem>>, vector<1x1x32xf32>
    %79 = vector.broadcast %78 : vector<1x1x32xf32> to vector<16x16x32xf32>
    %80 = arith.addf %77, %79 : vector<16x16x32xf32>
    %cst_43 = arith.constant 0.000000e+00 : f32
    %81 = vector.broadcast %cst_43 : f32 to vector<16x16x32xf32>
    %82 = arith.maximumf %80, %81 : vector<16x16x32xf32>
    %83 = vector.shape_cast %82 : vector<16x16x32xf32> to vector<256x32xf32>
    %c0_44 = arith.constant 0 : index
    %c0_45 = arith.constant 0 : index
    %84 = vector.load %arg6[%c0_44, %c0_45] : memref<32x8xf32, #tpu.memory_space<vmem>>, vector<32x8xf32>
    %cst_46 = arith.constant dense<0.000000e+00> : vector<256x8xf32>
    %85 = tpu.matmul %83, %84, %cst_46 {dimension_numbers = #tpu.dot_dimension_numbers<[1], [0], [0], [1], [0, 0, 1, 1], [], []>} : vector<256x32xf32>, vector<32x8xf32>, vector<256x8xf32> -> vector<256x8xf32>
    %c0_47 = arith.constant 0 : index
    %c0_48 = arith.constant 0 : index
    %86 = vector.load %arg7[%c0_47, %c0_48] : memref<1x8xf32, #tpu.memory_space<vmem>>, vector<1x8xf32>
    %87 = vector.broadcast %86 : vector<1x8xf32> to vector<256x8xf32>
    %88 = arith.addf %85, %87 : vector<256x8xf32>
    %89 = arith.addf %88, %1 : vector<256x8xf32>
    %c0_49 = arith.constant 0 : index
    %c0_50 = arith.constant 0 : index
    %c0_51 = arith.constant 0 : index
    %90 = vector.load %arg8[%c0_49, %c0_50, %c0_51] : memref<1x256x8xf32, #tpu.memory_space<vmem>>, vector<1x256x8xf32>
    %91 = vector.shape_cast %90 : vector<1x256x8xf32> to vector<256x8xf32>
    %92 = vector.shape_cast %89 : vector<256x8xf32> to vector<1x256x8xf32>
    tpu.vector_store %arg8[%c0_49, %c0_50, %c0_51], %92 {strides = array<i32>} : memref<1x256x8xf32, #tpu.memory_space<vmem>>, vector<1x256x8xf32>,
    return
  }
  func.func @transform_0(%arg0: i32) -> (i32, i32, i32) {
    %c0_i32 = arith.constant 0 : i32
    %c0_i32_0 = arith.constant 0 : i32
    %c0_i32_1 = arith.constant 0 : i32
    return %arg0, %c0_i32, %c0_i32_0 : i32, i32, i32
  }
  func.func @transform_1(%arg0: i32) -> (i32, i32) {
    %c0_i32 = arith.constant 0 : i32
    %c0_i32_0 = arith.constant 0 : i32
    %c0_i32_1 = arith.constant 0 : i32
    return %c0_i32, %c0_i32_0 : i32, i32
  }
  func.func @transform_2(%arg0: i32) -> (i32, i32) {
    %c0_i32 = arith.constant 0 : i32
    %c0_i32_0 = arith.constant 0 : i32
    %c0_i32_1 = arith.constant 0 : i32
    return %c0_i32, %c0_i32_0 : i32, i32
  }
  func.func @transform_3(%arg0: i32) -> (i32, i32, i32) {
    %c0_i32 = arith.constant 0 : i32
    %c0_i32_0 = arith.constant 0 : i32
    %c0_i32_1 = arith.constant 0 : i32
    %c0_i32_2 = arith.constant 0 : i32
    return %c0_i32, %c0_i32_0, %c0_i32_1 : i32, i32, i32
  }
  func.func @transform_4(%arg0: i32) -> (i32, i32, i32) {
    %c0_i32 = arith.constant 0 : i32
    %c0_i32_0 = arith.constant 0 : i32
    %c0_i32_1 = arith.constant 0 : i32
    %c0_i32_2 = arith.constant 0 : i32
    return %c0_i32, %c0_i32_0, %c0_i32_1 : i32, i32, i32
  }
  func.func @transform_5(%arg0: i32) -> (i32, i32) {
    %c0_i32 = arith.constant 0 : i32
    %c0_i32_0 = arith.constant 0 : i32
    %c0_i32_1 = arith.constant 0 : i32
    return %c0_i32, %c0_i32_0 : i32, i32
  }
  func.func @transform_6(%arg0: i32) -> (i32, i32) {
    %c0_i32 = arith.constant 0 : i32
    %c0_i32_0 = arith.constant 0 : i32
    %c0_i32_1 = arith.constant 0 : i32
    return %c0_i32, %c0_i32_0 : i32, i32
  }
  func.func @transform_7(%arg0: i32) -> (i32, i32, i32) {
    %c0_i32 = arith.constant 0 : i32
    %c0_i32_0 = arith.constant 0 : i32
    %c0_i32_1 = arith.constant 0 : i32
    return %arg0, %c0_i32, %c0_i32_0 : i32, i32, i32
  }
}

</mosaic_0001>

<bundles_post_ra>
// kernel: inverted_residual_forward.1
= control target key start
LH: loop header
LB: loop body
LE: loop exit
PB: predicated region body
PF: predicated region fallthrough
CT: control target
= control target key end

     0   :  { %s2122_s24 = smov 0   ;;  %s3107_s0 = inlined_call_operand.vmem [shape: f32[2,256,8], index: 0, kind: input, shape index: {}]   ;;  %s3108_s1 = inlined_call_operand.vmem [shape: f32[8,32], index: 1, kind: input, shape index: {}]   ;;  %s3109_s2 = inlined_call_operand.vmem [shape: f32[1,32], index: 2, kind: input, shape index: {}]   ;;  %s3110_s3 = inlined_call_operand.vmem [shape: f32[3,3,32], index: 3, kind: input, shape index: {}]   ;;  %s3111_s4 = inlined_call_operand.vmem [shape: f32[1,1,32], index: 4, kind: input, shape index: {}]   ;;  %s3112_s5 = inlined_call_operand.vmem [shape: f32[32,8], index: 5, kind: input, shape index: {}]   ;;  %s3113_s6 = inlined_call_operand.vmem [shape: f32[1,8], index: 6, kind: input, shape index: {}]   ;;  %s3114_s7 = inlined_call_operand.vmem [shape: f32[2,256,8], index: 7, kind: output, shape index: {}]  }
   0x1 LB: > { %s1945_s25 = sadd.s32 4294967295, %s2079_s24   ;;  %p1949_p0 = scmp.ge.s32.totalorder %s2079_s24, 1  ;;  %s2079_s24 = sphi %s2122_s24, %s17_s24  }
   0x2   : > { %p237_p1 = scmp.lt.s32.totalorder %s2079_s24, 3 }
   0x4   : > { %p238_p2 = pnand %p1949_p0, %p237_p1 }
   0x5   : > { %p269_p3 = scmp.lt.s32.totalorder (!%p238_p2), %s1945_s25, 1 }
   0x6   : > { %241 = sbr.rel (%p238_p2) target bundleno = 556 (0x22c), region = 48 }
   0xb   : > { %v311_v0 = vld [vmem:[%s3108_s1] sm:$0xff]  ;;  %s3116_s25 = smov (!%p269_p3, %s1945_s25), 1  ;;  %vm316_vm0 = vcmask 64512   ;;  %vm558_vm1 = vcmask 261120   ;;  %v2081_v20 = vmov 0.0   ;;  %v1612_v32 = vld [vmem:[%s3112_s5 + $0x18] sm:$0xff] }
   0xc   : > { %428 = vmatpush.msra.mxu0 %v311_v0  ;;  %2022 = vmatpush.msra.mxu3 %v311_v0  ;;  %s2020_s28 = sshll.u32 %s3116_s25, 8  ;;  %564 = vst.msk [vmem:[#allocation2 + $0x28] sm:$0xff] %vm558_vm1, %v2081_v20  ;;  %v2246_v24 = vld [vmem:[%s3109_s2] ss:$0 sm:$0xff]  ;;  %v1611_v33 = vld [vmem:[%s3112_s5 + $0x10] sm:$0xff]  ;;  %v1610_v34 = vld [vmem:[%s3112_s5 + $0x8] sm:$0xff] }
   0xd   : > { %s2141_s8 = scalar_lea.vmem %s3107_s0, %s2020_s28  ;;  %559 = vst.msk [vmem:[#allocation2] sm:$0xff] %vm558_vm1, %v2081_v20  ;;  %1725 = vmatpush.msra.mxu1 %v1612_v32  ;;  %2023 = vmatpush.msra.mxu2 %v1612_v32  ;;  %v1609_v36 = vld [vmem:[%s3112_s5] sm:$0xff]  ;;  %s2869_s16 = scalar_lea.vmem %s3114_s7, %s2020_s28 }
   0xe   : > { %v279_v1 = vld [vmem:[%s2141_s8] sm:$0xff]  ;;  %v280_v2 = vld [vmem:[%s2141_s8 + $0x8] sm:$0xff]  ;;  %v281_v3 = vld [vmem:[%s2141_s8 + $0x10] sm:$0xff]  ;;  %560 = vst.msk [vmem:[#allocation2 + $0x8] sm:$0xff] %vm558_vm1, %v2081_v20 }
   0xf   : > { %1954 = vmatmul.msk.f32.vlgmr.msra.gmra.mxu0 %vm316_vm0, %v279_v1  ;;  %v282_v4 = vld [vmem:[%s2141_s8 + $0x18] sm:$0xff]  ;;  %v283_v5 = vld [vmem:[%s2141_s8 + $0x20] sm:$0xff]  ;;  %v284_v6 = vld [vmem:[%s2141_s8 + $0x28] sm:$0xff]  ;;  %561 = vst.msk [vmem:[#allocation2 + $0x10] sm:$0xff] %vm558_vm1, %v2081_v20  ;;  %1726 = vmatpush.msra.mxu1 %v1611_v33 }
  0x10   : > { %v285_v7 = vld [vmem:[%s2141_s8 + $0x30] sm:$0xff]  ;;  %v296_v8 = vld [vmem:[%s2141_s8 + $0x88] sm:$0xff]  ;;  %v286_v9 = vld [vmem:[%s2141_s8 + $0x38] sm:$0xff]  ;;  %562 = vst.msk [vmem:[#allocation2 + $0x18] sm:$0xff] %vm558_vm1, %v2081_v20  ;;  %2024 = vmatpush.msra.mxu2 %v1611_v33 }
  0x11   : > { %1971 = vmatmul.msk.f32.vlgmr.msra.gmra.mxu3 %vm316_vm0, %v296_v8  ;;  %v297_v10 = vld [vmem:[%s2141_s8 + $0x90] sm:$0xff]  ;;  %v287_v11 = vld [vmem:[%s2141_s8 + $0x40] sm:$0xff]  ;;  %v298_v12 = vld [vmem:[%s2141_s8 + $0x98] sm:$0xff]  ;;  %563 = vst.msk [vmem:[#allocation2 + $0x20] sm:$0xff] %vm558_vm1, %v2081_v20  ;;  %1727 = vmatpush.msra.mxu1 %v1610_v34 }
  0x12   : > { %v288_v13 = vld [vmem:[%s2141_s8 + $0x48] sm:$0xff]  ;;  %v299_v14 = vld [vmem:[%s2141_s8 + $0xa0] sm:$0xff]  ;;  %v289_v15 = vld [vmem:[%s2141_s8 + $0x50] sm:$0xff]  ;;  %565 = vst.msk [vmem:[#allocation2 + $0x30] sm:$0xff] %vm558_vm1, %v2081_v20  ;;  %2025 = vmatpush.msra.mxu2 %v1610_v34 }
  0x13   : > { %v300_v16 = vld [vmem:[%s2141_s8 + $0xa8] sm:$0xff]  ;;  %v290_v17 = vld [vmem:[%s2141_s8 + $0x58] sm:$0xff]  ;;  %v291_v18 = vld [vmem:[%s2141_s8 + $0x60] sm:$0xff]  ;;  %566 = vst.msk [vmem:[#allocation2 + $0x38] sm:$0xff] %vm558_vm1, %v2081_v20  ;;  %1728 = vmatpush.msra.mxu1 %v1609_v36 }
  0x14   : > { %v301_v19 = vld [vmem:[%s2141_s8 + $0xb0] sm:$0xff]  ;;  %v292_v21 = vld [vmem:[%s2141_s8 + $0x68] sm:$0xff]  ;;  %567 = vst.msk [vmem:[#allocation2 + $0x40] sm:$0xff] %vm558_vm1, %v2081_v20  ;;  %v294_v23 = vld [vmem:[%s2141_s8 + $0x78] sm:$0xff]  ;;  %2026 = vmatpush.msra.mxu2 %v1609_v36 }
  0x15   : > { %568 = vst.msk [vmem:[#allocation2 + $0x48] sm:$0xff] %vm558_vm1, %v2081_v20  ;;  %v293_v22 = vld [vmem:[%s2141_s8 + $0x70] sm:$0xff]  ;;  %v295_v26 = vld [vmem:[%s2141_s8 + $0x80] sm:$0xff]  ;;  %v302_v29 = vld [vmem:[%s2141_s8 + $0xb8] sm:$0xff] }
  0x16   : > { %569 = vst.msk [vmem:[#allocation2 + $0x50] sm:$0xff] %vm558_vm1, %v2081_v20  ;;  %v303_v31 = vld [vmem:[%s2141_s8 + $0xc0] sm:$0xff]  ;;  %v304_v37 = vld [vmem:[%s2141_s8 + $0xc8] sm:$0xff]  ;;  %v305_v40 = vld [vmem:[%s2141_s8 + $0xd0] sm:$0xff] }
  0x17   : > { %1955 = vmatmul.msk.f32.gmra.mxu0 %vm316_vm0, %v280_v2  ;;  %570 = vst.msk [vmem:[#allocation2 + $0x58] sm:$0xff] %vm558_vm1, %v2081_v20  ;;  %v664_v39 = vld [vmem:[%s3110_s3] sm:$0x7]  ;;  %v667_v43 = vld [vmem:[#allocation2 + $0x7] sm:$0xff]  ;;  %v665_v50 = vld [vmem:[%s3110_s3 + $0x4] sm:$0x7] }
  0x18   : > { %571 = vst.msk [vmem:[#allocation2 + $0x60] sm:$0xff] %vm558_vm1, %v2081_v20  ;;  %v2338_v41 = vperm.slane %v664_v39, 0  ;;  %v2340_v42 = vperm.slane %v664_v39, 1  ;;  %v764_v44 = vld [vmem:[#allocation2 + $0x8] sm:$0xff]  ;;  %v2353_v48 = vperm.slane %v664_v39, 2  ;;  %v306_v53 = vld [vmem:[%s2141_s8 + $0xd8] sm:$0xff] }
  0x19   : > { %1972 = vmatmul.msk.f32.gmra.mxu3 %vm316_vm0, %v297_v10  ;;  %572 = vst.msk [vmem:[#allocation2 + $0x68] sm:$0xff] %vm558_vm1, %v2081_v20  ;;  %v861_v51 = vld [vmem:[#allocation2 + $0x9] sm:$0xff]  ;;  %v2372_v58 = vperm.slane %v665_v50, 0  ;;  %v862_v8 = vld [vmem:[#allocation2 + $0x11] sm:$0xff]  ;;  %v2389_v10 = vperm.slane %v665_v50, 1 }
  0x1a   : > { %573 = vst.msk [vmem:[#allocation2 + $0x70] sm:$0xff] %vm558_vm1, %v2081_v20  ;;  %v700_v46 = vmul.f32 %v2338_v41, %v667_v43  ;;  %v797_v47 = vmul.f32 %v2340_v42, %v764_v44  ;;  %v894_v57 = vmul.f32 %v2353_v48, %v861_v51  ;;  %v668_v59 = vld [vmem:[#allocation2 + $0xf] sm:$0xff] }
  0x1b   : > { %574 = vst.msk [vmem:[#allocation2 + $0x78] sm:$0xff] %vm558_vm1, %v2081_v20  ;;  %v765_v60 = vld [vmem:[#allocation2 + $0x10] sm:$0xff]  ;;  %v701_v2 = vmul.f32 %v2338_v41, %v668_v59  ;;  %v308_v44 = vld [vmem:[%s2141_s8 + $0xe8] sm:$0xff] }
  0x1c   : > { %575 = vst.msk [vmem:[#allocation2 + $0x80] sm:$0xff] %vm558_vm1, %v2081_v20  ;;  %v829_v56 = vadd.f32 %v797_v47, %v700_v46 }
  0x1d   : > { %576 = vst.msk [vmem:[#allocation2 + $0x88] sm:$0xff] %vm558_vm1, %v2081_v20 }
  0x1e   : > { %577 = vst.msk [vmem:[#allocation2 + $0x90] sm:$0xff] %vm558_vm1, %v2081_v20 }
  0x1f   : > { %1956 = vmatmul.msk.f32.gmra.mxu0 %vm316_vm0, %v281_v3  ;;  %578 = vst.msk [vmem:[#allocation2 + $0x98] sm:$0xff] %vm558_vm1, %v2081_v20  ;;  %v798_v3 = vmul.f32 %v2340_v42, %v765_v60 }
  0x20   : > { %579 = vst.msk [vmem:[#allocation2 + $0xa0] sm:$0xff] %vm558_vm1, %v2081_v20 }
  0x21   : > { %1973 = vmatmul.msk.f32.gmra.mxu3 %vm316_vm0, %v298_v12  ;;  %580 = vst.msk [vmem:[#allocation2 + $0xa8] sm:$0xff] %vm558_vm1, %v2081_v20  ;;  %v666_v12 = vld [vmem:[%s3110_s3 + $0x8] sm:$0x7] }
  0x22   : > { %581 = vst.msk [vmem:[#allocation2 + $0xb0] sm:$0xff] %vm558_vm1, %v2081_v20  ;;  %v2411_v34 = vperm.slane %v666_v12, 2 }
  0x23   : > { %582 = vst.msk [vmem:[#allocation2 + $0xb8] sm:$0xff] %vm558_vm1, %v2081_v20 }
  0x24   : > { %583 = vst.msk [vmem:[#allocation2 + $0xc0] sm:$0xff] %vm558_vm1, %v2081_v20 }
  0x25   : > { %584 = vst.msk [vmem:[#allocation2 + $0xc8] sm:$0xff] %vm558_vm1, %v2081_v20 }
  0x26   : > { %585 = vst.msk [vmem:[#allocation2 + $0xd0] sm:$0xff] %vm558_vm1, %v2081_v20 }
  0x27   : > { %1957 = vmatmul.msk.f32.gmra.mxu0 %vm316_vm0, %v282_v4  ;;  %586 = vst.msk [vmem:[#allocation2 + $0xd8] sm:$0xff] %vm558_vm1, %v2081_v20 }
  0x28   : > { %587 = vst.msk [vmem:[#allocation2 + $0xe0] sm:$0xff] %vm558_vm1, %v2081_v20 }
  0x29   : > { %1974 = vmatmul.msk.f32.gmra.mxu3 %vm316_vm0, %v299_v14  ;;  %588 = vst.msk [vmem:[#allocation2 + $0xe8] sm:$0xff] %vm558_vm1, %v2081_v20  ;;  %v830_v14 = vadd.f32 %v798_v3, %v701_v2  ;;  %v2443_v2 = vld [vmem:[%s3111_s4] ss:$0 sm:$0xff] }
  0x2a   : > { %589 = vst.msk [vmem:[#allocation2 + $0xf0] sm:$0xff] %vm558_vm1, %v2081_v20 }
  0x2b   : > { %590 = vst.msk [vmem:[#allocation2 + $0xf8] sm:$0xff] %vm558_vm1, %v2081_v20 }
  0x2c   : > { %591 = vst.msk [vmem:[#allocation2 + $0x100] sm:$0xff] %vm558_vm1, %v2081_v20 }
  0x2d   : > { %592 = vst.msk [vmem:[#allocation2 + $0x108] sm:$0xff] %vm558_vm1, %v2081_v20 }
  0x2e   : > { %593 = vst.msk [vmem:[#allocation2 + $0x110] sm:$0xff] %vm558_vm1, %v2081_v20 }
  0x2f   : > { %1958 = vmatmul.msk.f32.gmra.mxu0 %vm316_vm0, %v283_v5  ;;  %594 = vst.msk [vmem:[#allocation2 + $0x118] sm:$0xff] %vm558_vm1, %v2081_v20 }
  0x30   : > { %595 = vst.msk [vmem:[#allocation2 + $0x120] sm:$0xff] %vm558_vm1, %v2081_v20 }
  0x31   : > { %1975 = vmatmul.msk.f32.gmra.mxu3 %vm316_vm0, %v300_v16  ;;  %596 = vst.msk [vmem:[#allocation2 + $0x128] sm:$0xff] %vm558_vm1, %v2081_v20 }
  0x32   : > { %597 = vst.msk [vmem:[#allocation2 + $0x130] sm:$0xff] %vm558_vm1, %v2081_v20 }
  0x33   : > { %598 = vst.msk [vmem:[#allocation2 + $0x138] sm:$0xff] %vm558_vm1, %v2081_v20 }
  0x34   : > { %599 = vst.msk [vmem:[#allocation2 + $0x140] sm:$0xff] %vm558_vm1, %v2081_v20 }
  0x35   : > { %600 = vst.msk [vmem:[#allocation2 + $0x148] sm:$0xff] %vm558_vm1, %v2081_v20 }
  0x36   : > { %601 = vst.msk [vmem:[#allocation2 + $0x150] sm:$0xff] %vm558_vm1, %v2081_v20 }
  0x37   : > { %1959 = vmatmul.msk.f32.gmra.mxu0 %vm316_vm0, %v284_v6  ;;  %602 = vst.msk [vmem:[#allocation2 + $0x158] sm:$0xff] %vm558_vm1, %v2081_v20  ;;  %v926_v6 = vadd.f32 %v894_v57, %v829_v56 }
  0x38   : > { %603 = vst.msk [vmem:[#allocation2 + $0x160] sm:$0xff] %vm558_vm1, %v2081_v20 }
  0x39   : > { %1976 = vmatmul.msk.f32.gmra.mxu3 %vm316_vm0, %v301_v19  ;;  %604 = vst.msk [vmem:[#allocation2 + $0x168] sm:$0xff] %vm558_vm1, %v2081_v20  ;;  %v2403_v19 = vperm.slane %v666_v12, 0 }
  0x3a   : > { %605 = vst.msk [vmem:[#allocation2 + $0x170] sm:$0xff] %vm558_vm1, %v2081_v20 }
  0x3b   : > { %606 = vst.msk [vmem:[#allocation2 + $0x178] sm:$0xff] %vm558_vm1, %v2081_v20 }
  0x3c   : > { %607 = vst.msk [vmem:[#allocation2 + $0x180] sm:$0xff] %vm558_vm1, %v2081_v20 }
  0x3d   : > { %608 = vst.msk [vmem:[#allocation2 + $0x188] sm:$0xff] %vm558_vm1, %v2081_v20 }
  0x3e   : > { %609 = vst.msk [vmem:[#allocation2 + $0x190] sm:$0xff] %vm558_vm1, %v2081_v20 }
  0x3f   : > { %1960 = vmatmul.msk.f32.gmra.mxu0 %vm316_vm0, %v285_v7  ;;  %610 = vst.msk [vmem:[#allocation2 + $0x198] sm:$0xff] %vm558_vm1, %v2081_v20 }
  0x40   : > { %611 = vst.msk [vmem:[#allocation2 + $0x1a0] sm:$0xff] %vm558_vm1, %v2081_v20 }
  0x41   : > { %1977 = vmatmul.msk.f32.gmra.mxu3 %vm316_vm0, %v302_v29  ;;  %612 = vst.msk [vmem:[#allocation2 + $0x1a8] sm:$0xff] %vm558_vm1, %v2081_v20 }
  0x42   : > { %613 = vst.msk [vmem:[#allocation2 + $0x1b0] sm:$0xff] %vm558_vm1, %v2081_v20 }
  0x43   : > { %614 = vst.msk [vmem:[#allocation2 + $0x1b8] sm:$0xff] %vm558_vm1, %v2081_v20 }
  0x44   : > { %615 = vst.msk [vmem:[#allocation2 + $0x1c0] sm:$0xff] %vm558_vm1, %v2081_v20 }
  0x45   : > { %616 = vst.msk [vmem:[#allocation2 + $0x1c8] sm:$0xff] %vm558_vm1, %v2081_v20 }
  0x46   : > { %617 = vst.msk [vmem:[#allocation2 + $0x1d0] sm:$0xff] %vm558_vm1, %v2081_v20 }
  0x47   : > { %1961 = vmatmul.msk.f32.gmra.mxu0 %vm316_vm0, %v286_v9  ;;  %618 = vst.msk [vmem:[#allocation2 + $0x1d8] sm:$0xff] %vm558_vm1, %v2081_v20 }
  0x48   : > { %619 = vst.msk [vmem:[#allocation2 + $0x1e0] sm:$0xff] %vm558_vm1, %v2081_v20 }
  0x49   : > { %1978 = vmatmul.msk.f32.gmra.mxu3 %vm316_vm0, %v303_v31  ;;  %620 = vst.msk [vmem:[#allocation2 + $0x1e8] sm:$0xff] %vm558_vm1, %v2081_v20 }
  0x4a   : > { %621 = vst.msk [vmem:[#allocation2 + $0x1f0] sm:$0xff] %vm558_vm1, %v2081_v20 }
  0x4b   : > { %622 = vst.msk [vmem:[#allocation2 + $0x1f8] sm:$0xff] %vm558_vm1, %v2081_v20 }
  0x4c   : > { %623 = vst.msk [vmem:[#allocation2 + $0x200] sm:$0xff] %vm558_vm1, %v2081_v20 }
  0x4d   : > { %624 = vst.msk [vmem:[#allocation2 + $0x208] sm:$0xff] %vm558_vm1, %v2081_v20 }
  0x4e   : > { %625 = vst.msk [vmem:[#allocation2 + $0x210] sm:$0xff] %vm558_vm1, %v2081_v20 }
  0x4f   : > { %1962 = vmatmul.msk.f32.gmra.mxu0 %vm316_vm0, %v287_v11  ;;  %626 = vst.msk [vmem:[#allocation2 + $0x218] sm:$0xff] %vm558_vm1, %v2081_v20  ;;  %v307_v11 = vld [vmem:[%s2141_s8 + $0xe0] sm:$0xff] }
  0x50   : > { %627 = vst.msk [vmem:[#allocation2 + $0x220] sm:$0xff] %vm558_vm1, %v2081_v20 }
  0x51   : > { %1979 = vmatmul.msk.f32.gmra.mxu3 %vm316_vm0, %v304_v37  ;;  %628 = vst.msk [vmem:[#allocation2 + $0x228] sm:$0xff] %vm558_vm1, %v2081_v20 }
  0x52   : > { %629 = vst.msk [vmem:[#allocation2 + $0x230] sm:$0xff] %vm558_vm1, %v2081_v20 }
  0x53   : > { %630 = vst.msk [vmem:[#allocation2 + $0x238] sm:$0xff] %vm558_vm1, %v2081_v20 }
  0x57   : > { %1963 = vmatmul.msk.f32.gmra.mxu0 %vm316_vm0, %v288_v13 }
  0x59   : > { %1980 = vmatmul.msk.f32.gmra.mxu3 %vm316_vm0, %v305_v40 }
  0x5f   : > { %1964 = vmatmul.msk.f32.gmra.mxu0 %vm316_vm0, %v289_v15  ;;  %v895_v15 = vmul.f32 %v2353_v48, %v862_v8 }
  0x61   : > { %1981 = vmatmul.msk.f32.gmra.mxu3 %vm316_vm0, %v306_v53 }
  0x67   : > { %1965 = vmatmul.msk.f32.gmra.mxu0 %vm316_vm0, %v290_v17  ;;  %v2399_v17 = vperm.slane %v665_v50, 2 }
  0x69   : > { %1982 = vmatmul.msk.f32.gmra.mxu3 %vm316_vm0, %v307_v11 }
  0x6f   : > { %1966 = vmatmul.msk.f32.gmra.mxu0 %vm316_vm0, %v291_v18 }
  0x71   : > { %1983 = vmatmul.msk.f32.gmra.mxu3 %vm316_vm0, %v308_v44 }
  0x77   : > { %1967 = vmatmul.msk.f32.gmra.mxu0 %vm316_vm0, %v292_v21 }
  0x7f   : > { %1968 = vmatmul.msk.f32.gmra.mxu0 %vm316_vm0, %v293_v22 }
  0x87   : > { %1969 = vmatmul.msk.f32.gmra.mxu0 %vm316_vm0, %v294_v23  ;;  %v927_v23 = vadd.f32 %v895_v15, %v830_v14 }
  0x8c   : > { %v430_v25 = vpop.f32.mrf.mxu0 }
  0x8d   : > { %v431_v27 = vadd.f32 %v2246_v24, %v430_v25 }
  0x8f   : > { %v526_v28 = vmax.f32 %v431_v27, 0.0  ;;  %1970 = vmatmul.msk.f32.gmra.mxu0 %vm316_vm0, %v295_v26  ;;  %v2407_v27 = vperm.slane %v666_v12, 1 }
  0x91   : > { %632 = vst.msk [vmem:[#allocation2 + $0x28] sm:$0xff] %vm558_vm1, %v526_v28 }
  0x94   : > { %v433_v30 = vpop.f32.mrf.mxu0 }
  0x95   : > { %v434_v49 = vadd.f32 %v2246_v24, %v433_v30 }
  0x97   : > { %v527_v61 = vmax.f32 %v434_v49, 0.0 }
  0x98   : > { %v958_v62 = vld [vmem:[#allocation2 + $0x27] sm:$0xff] }
  0x99   : > { %v991_v7 = vmul.f32 %v2372_v58, %v958_v62  ;;  %633 = vst.msk [vmem:[#allocation2 + $0x30] sm:$0xff] %vm558_vm1, %v527_v61  ;;  %v1055_v13 = vld [vmem:[#allocation2 + $0x28] sm:$0xff]  ;;  %v702_v20 = vmul.f32 %v958_v62, %v2338_v41 }
  0x9a   : > { %v1088_v18 = vmul.f32 %v2389_v10, %v1055_v13  ;;  %v799_v21 = vmul.f32 %v1055_v13, %v2340_v42 }
  0x9b   : > { %v1023_v16 = vadd.f32 %v991_v7, %v926_v6 }
  0x9c   : > { %v436_v35 = vpop.f32.mrf.mxu0 }
  0x9d   : > { %v437_v52 = vadd.f32 %v2246_v24, %v436_v35  ;;  %v1120_v25 = vadd.f32 %v1088_v18, %v1023_v16 }
  0x9f   : > { %v528_v63 = vmax.f32 %v437_v52, 0.0 }
  0xa0   : > { %v1152_v26 = vld [vmem:[#allocation2 + $0x29] sm:$0xff]  ;;  %v1153_v36 = vld [vmem:[#allocation2 + $0x31] sm:$0xff] }
  0xa1   : > { %634 = vst.msk [vmem:[#allocation2 + $0x48] sm:$0xff] %vm558_vm1, %v528_v63  ;;  %v959_v29 = vld [vmem:[#allocation2 + $0x2f] sm:$0xff]  ;;  %v1185_v31 = vmul.f32 %v2399_v17, %v1152_v26  ;;  %v896_v37 = vmul.f32 %v1152_v26, %v2353_v48  ;;  %v1186_v52 = vmul.f32 %v2399_v17, %v1153_v36  ;;  %v897_v12 = vmul.f32 %v1153_v36, %v2353_v48 }
  0xa2   : > { %v1056_v30 = vld [vmem:[#allocation2 + $0x30] sm:$0xff]  ;;  %v992_v35 = vmul.f32 %v2372_v58, %v959_v29 }
  0xa3   : > { %v1217_v46 = vadd.f32 %v1185_v31, %v1120_v25  ;;  %v1089_v49 = vmul.f32 %v2389_v10, %v1056_v30  ;;  %v800_v6 = vmul.f32 %v1056_v30, %v2340_v42 }
  0xa4   : > { %v439_v38 = vpop.f32.mrf.mxu0  ;;  %v1024_v47 = vadd.f32 %v992_v35, %v927_v23 }
  0xa5   : > { %v440_v54 = vadd.f32 %v2246_v24, %v439_v38 }
  0xa6   : > { %v1121_v57 = vadd.f32 %v1089_v49, %v1024_v47 }
  0xa7   : > { %v529_v0 = vmax.f32 %v440_v54, 0.0 }
  0xa8   : > { %v1250_v32 = vld [vmem:[#allocation2 + $0x47] sm:$0xff]  ;;  %v1218_v3 = vadd.f32 %v1186_v52, %v1121_v57 }
  0xa9   : > { %635 = vst.msk [vmem:[#allocation2 + $0x50] sm:$0xff] %vm558_vm1, %v529_v0  ;;  %v1347_v33 = vld [vmem:[#allocation2 + $0x48] sm:$0xff]  ;;  %v1283_v38 = vmul.f32 %v2403_v19, %v1250_v32  ;;  %v993_v54 = vmul.f32 %v1250_v32, %v2372_v58  ;;  %v704_v31 = vmul.f32 %v1250_v32, %v2338_v41 }
  0xaa   : > { %v1380_v51 = vmul.f32 %v2407_v27, %v1347_v33  ;;  %v1090_v63 = vmul.f32 %v1347_v33, %v2389_v10  ;;  %v801_v35 = vmul.f32 %v1347_v33, %v2340_v42 }
  0xac   : > { %v442_v45 = vpop.f32.mrf.mxu0 }
  0xad   : > { %v443_v55 = vadd.f32 %v2246_v24, %v442_v45  ;;  %v831_v45 = vadd.f32 %v799_v21, %v702_v20  ;;  %v309_v21 = vld [vmem:[%s2141_s8 + $0xf0] sm:$0xff] }
  0xae   : > { %1984 = vmatmul.msk.f32.gmra.mxu3 %vm316_vm0, %v309_v21 }
  0xaf   : > { %v530_v4 = vmax.f32 %v443_v55, 0.0  ;;  %v928_v53 = vadd.f32 %v896_v37, %v831_v45  ;;  %v1315_v55 = vadd.f32 %v1283_v38, %v1217_v46 }
  0xb0   : > { %v2416_v39 = vld [vmem:[#allocation2 + $0x49] sm:$0xff]  ;;  %v1445_v7 = vld [vmem:[#allocation2 + $0x51] sm:$0xff] }
  0xb1   : > { %636 = vst.msk [vmem:[#allocation2 + $0x68] sm:$0xff] %vm558_vm1, %v530_v4  ;;  %v2418_v43 = vld [vmem:[#allocation2 + $0x4f] sm:$0xff]  ;;  %v1477_v56 = vmul.f32 %v2411_v34, %v2416_v39  ;;  %v1025_v62 = vadd.f32 %v993_v54, %v928_v53  ;;  %v1187_v0 = vmul.f32 %v2416_v39, %v2399_v17  ;;  %v1478_v25 = vmul.f32 %v2411_v34, %v1445_v7 }
  0xb2   : > { %v2422_v50 = vld [vmem:[#allocation2 + $0x50] sm:$0xff]  ;;  %v1284_v59 = vmul.f32 %v2403_v19, %v2418_v43  ;;  %v994_v16 = vmul.f32 %v2418_v43, %v2372_v58  ;;  %v1188_v47 = vmul.f32 %v1445_v7, %v2399_v17  ;;  %v898_v49 = vmul.f32 %v2416_v39, %v2353_v48 }
  0xb3   : > { %v1381_v61 = vmul.f32 %v2407_v27, %v2422_v50  ;;  %v833_v54 = vadd.f32 %v801_v35, %v704_v31  ;;  %v705_v57 = vmul.f32 %v2418_v43, %v2338_v41 }
  0xb4   : > { %v445_v1 = vpop.f32.mrf.mxu0  ;;  %v1316_v14 = vadd.f32 %v1284_v59, %v1218_v3  ;;  %v802_v59 = vmul.f32 %v2422_v50, %v2340_v42 }
  0xb5   : > { %v446_v5 = vadd.f32 %v2246_v24, %v445_v1  ;;  %v1412_v1 = vadd.f32 %v1380_v51, %v1315_v55 }
  0xb6   : > { %v1413_v23 = vadd.f32 %v1381_v61, %v1316_v14 }
  0xb7   : > { %v531_v9 = vmax.f32 %v446_v5, 0.0  ;;  %v703_v5 = vmul.f32 %v959_v29, %v2338_v41  ;;  %v1509_v13 = vadd.f32 %v1477_v56, %v1412_v1  ;;  %v930_v1 = vadd.f32 %v898_v49, %v833_v54 }
  0xb8   : > { %v2433_v60 = vld [vmem:[#allocation2 + $0x67] sm:$0xff]  ;;  %v1510_v37 = vadd.f32 %v1478_v25, %v1413_v23 }
  0xb9   : > { %637 = vst.msk [vmem:[#allocation2 + $0x70] sm:$0xff] %vm558_vm1, %v531_v9  ;;  %v1122_v9 = vadd.f32 %v1090_v63, %v1025_v62  ;;  %v1285_v11 = vmul.f32 %v2403_v19, %v2433_v60  ;;  %v832_v15 = vadd.f32 %v800_v6, %v703_v5  ;;  %v2456_v26 = vld [vmem:[#allocation2 + $0x68] sm:$0xff]  ;;  %v995_v56 = vmul.f32 %v2433_v60, %v2372_v58  ;;  %v310_v62 = vld [vmem:[%s2141_s8 + $0xf8] sm:$0xff] }
  0xba   : > { %v1382_v45 = vmul.f32 %v2407_v27, %v2456_v26  ;;  %v1546_v55 = vadd.f32 %v2443_v2, %v1510_v37  ;;  %1985 = vmatmul.msk.f32.gmra.mxu3 %vm316_vm0, %v310_v62  ;;  %v834_v6 = vadd.f32 %v802_v59, %v705_v57  ;;  %v1092_v43 = vmul.f32 %v2456_v26, %v2389_v10 }
  0xbb   : > { %v1219_v20 = vadd.f32 %v1187_v0, %v1122_v9  ;;  %v1027_v5 = vadd.f32 %v995_v56, %v930_v1 }
  0xbc   : > { %v448_v22 = vpop.f32.mrf.mxu0  ;;  %v1578_v3 = vmax.f32 %v1546_v55, 0.0 }
  0xbd   : > { %v449_v28 = vadd.f32 %v2246_v24, %v448_v22  ;;  %v1545_v22 = vadd.f32 %v2443_v2, %v1509_v13  ;;  %v1317_v29 = vadd.f32 %v1285_v11, %v1219_v20  ;;  %v899_v13 = vmul.f32 %v1445_v7, %v2353_v48 }
  0xbf   : > { %v532_v40 = vmax.f32 %v449_v28, 0.0  ;;  %v929_v28 = vadd.f32 %v897_v12, %v832_v15  ;;  %v1577_v36 = vmax.f32 %v1545_v22, 0.0  ;;  %v1414_v51 = vadd.f32 %v1382_v45, %v1317_v29  ;;  %v481_v15 = vpop.f32.mrf.mxu3 }
  0xc0   : > { %v2459_v30 = vld [vmem:[#allocation2 + $0x69] sm:$0xff]  ;;  %v482_v20 = vadd.f32 %v2246_v24, %v481_v15  ;;  %v1124_v22 = vadd.f32 %v1092_v43, %v1027_v5  ;;  %v931_v25 = vadd.f32 %v899_v13, %v834_v6 }
  0xc1   : > { %638 = vst.msk [vmem:[#allocation2 + $0x88] sm:$0xff] %vm558_vm1, %v532_v40  ;;  %v1026_v38 = vadd.f32 %v994_v16, %v929_v28  ;;  %v1091_v40 = vmul.f32 %v2422_v50, %v2389_v10  ;;  %v1253_v44 = vld [vmem:[#allocation2 + $0x6f] sm:$0xff]  ;;  %1986 = vmatmul.msk.f32.vlgmr.msra.gmra.mxu1 %vm558_vm1, %v1577_v36  ;;  %v1479_v32 = vmul.f32 %v2411_v34, %v2459_v30 }
  0xc2   : > { %v1286_v53 = vmul.f32 %v2403_v19, %v1253_v44  ;;  %v1350_v0 = vld [vmem:[#allocation2 + $0x70] sm:$0xff]  ;;  %v1189_v12 = vmul.f32 %v2459_v30, %v2399_v17  ;;  %v996_v14 = vmul.f32 %v1253_v44, %v2372_v58  ;;  %v543_v29 = vmax.f32 %v482_v20, 0.0 }
  0xc3   : > { %v1123_v33 = vadd.f32 %v1091_v40, %v1026_v38  ;;  %v1511_v39 = vadd.f32 %v1479_v32, %v1414_v51  ;;  %v1447_v16 = vld [vmem:[#allocation2 + $0x71] sm:$0xff]  ;;  %v1093_v40 = vmul.f32 %v1350_v0, %v2389_v10  ;;  %v707_v49 = vmul.f32 %v1253_v44, %v2338_v41 }
  0xc4   : > { %v451_v4 = vpop.f32.mrf.mxu0  ;;  %v1480_v35 = vmul.f32 %v2411_v34, %v1447_v16  ;;  %v1221_v7 = vadd.f32 %v1189_v12, %v1124_v22  ;;  %v1028_v36 = vadd.f32 %v996_v14, %v931_v25  ;;  %649 = vst.msk [vmem:[#allocation2 + $0x130] sm:$0xff] %vm558_vm1, %v543_v29  ;;  %v804_v51 = vmul.f32 %v1350_v0, %v2340_v42 }
  0xc5   : > { %v452_v8 = vadd.f32 %v2246_v24, %v451_v4  ;;  %v1220_v63 = vadd.f32 %v1188_v47, %v1123_v33  ;;  %v1547_v9 = vadd.f32 %v2443_v2, %v1511_v39  ;;  %v706_v33 = vmul.f32 %v2433_v60, %v2338_v41 }
  0xc6   : > { %v803_v47 = vmul.f32 %v2456_v26, %v2340_v42  ;;  %v1125_v55 = vadd.f32 %v1093_v40, %v1028_v36  ;;  %v900_v56 = vmul.f32 %v2459_v30, %v2353_v48  ;;  %v1190_v26 = vmul.f32 %v1447_v16, %v2399_v17 }
  0xc7   : > { %v533_v18 = vmax.f32 %v452_v8, 0.0  ;;  %v1318_v4 = vadd.f32 %v1286_v53, %v1220_v63  ;;  %v1383_v8 = vmul.f32 %v2407_v27, %v1350_v0  ;;  %v1579_v31 = vmax.f32 %v1547_v9, 0.0  ;;  %v484_v60 = vpop.f32.mrf.mxu3 }
  0xc8   : > { %v2489_v50 = vld [vmem:[#allocation2 + $0x87] sm:$0xff]  ;;  %v485_v59 = vadd.f32 %v2246_v24, %v484_v60  ;;  %v835_v39 = vadd.f32 %v803_v47, %v706_v33  ;;  %v836_v30 = vadd.f32 %v804_v51, %v707_v49 }
  0xc9   : > { %639 = vst.msk [vmem:[#allocation2 + $0x90] sm:$0xff] %vm558_vm1, %v533_v18  ;;  %1987 = vmatmul.msk.f32.gmra.mxu1 %vm558_vm1, %v1578_v3  ;;  %v1415_v21 = vadd.f32 %v1383_v8, %v1318_v4  ;;  %v1287_v23 = vmul.f32 %v2403_v19, %v2489_v50  ;;  %v1351_v37 = vld [vmem:[#allocation2 + $0x88] sm:$0xff]  ;;  %v997_v63 = vmul.f32 %v2489_v50, %v2372_v58 }
  0xca   : > { %v544_v1 = vmax.f32 %v485_v59, 0.0  ;;  %v1222_v4 = vadd.f32 %v1190_v26, %v1125_v55  ;;  %v932_v5 = vadd.f32 %v900_v56, %v835_v39  ;;  %v901_v8 = vmul.f32 %v1447_v16, %v2353_v48 }
  0xcb   : > { %v1512_v45 = vadd.f32 %v1480_v35, %v1415_v21  ;;  %v1319_v32 = vadd.f32 %v1287_v23, %v1221_v7  ;;  %v1094_v16 = vmul.f32 %v1351_v37, %v2389_v10  ;;  %v805_v33 = vmul.f32 %v1351_v37, %v2340_v42 }
  0xcc   : > { %v454_v46 = vpop.f32.mrf.mxu0  ;;  %v1029_v12 = vadd.f32 %v997_v63, %v932_v5  ;;  %650 = vst.msk [vmem:[#allocation2 + $0x148] sm:$0xff] %vm558_vm1, %v544_v1  ;;  %v933_v14 = vadd.f32 %v901_v8, %v836_v30 }
  0xcd   : > { %v455_v52 = vadd.f32 %v2246_v24, %v454_v46 }
  0xce   : > { %v1126_v35 = vadd.f32 %v1094_v16, %v1029_v12 }
  0xcf   : > { %v534_v61 = vmax.f32 %v455_v52, 0.0  ;;  %v1384_v52 = vmul.f32 %v2407_v27, %v1351_v37  ;;  %v487_v22 = vpop.f32.mrf.mxu3 }
  0xd0   : > { %v2503_v38 = vld [vmem:[#allocation2 + $0x89] sm:$0xff]  ;;  %v2542_v23 = vld [vmem:[#allocation2 + $0x91] sm:$0xff]  ;;  %v488_v29 = vadd.f32 %v2246_v24, %v487_v22 }
  0xd1   : > { %640 = vst.msk [vmem:[#allocation2 + $0xa8] sm:$0xff] %vm558_vm1, %v534_v61  ;;  %v2506_v46 = vld [vmem:[#allocation2 + $0x8f] sm:$0xff]  ;;  %1988 = vmatmul.msk.f32.gmra.mxu1 %vm558_vm1, %v1579_v31  ;;  %v1481_v53 = vmul.f32 %v2411_v34, %v2503_v38  ;;  %v1548_v61 = vadd.f32 %v2443_v2, %v1512_v45  ;;  %v1416_v62 = vadd.f32 %v1384_v52, %v1319_v32 }
  0xd2   : > { %v1288_v44 = vmul.f32 %v2403_v19, %v2506_v46  ;;  %v1352_v6 = vld [vmem:[#allocation2 + $0x90] sm:$0xff]  ;;  %v998_v43 = vmul.f32 %v2506_v46, %v2372_v58  ;;  %v1191_v21 = vmul.f32 %v2503_v38, %v2399_v17  ;;  %v545_v45 = vmax.f32 %v488_v29, 0.0 }
  0xd3   : > { %v1513_v3 = vadd.f32 %v1481_v53, %v1416_v62  ;;  %v1580_v9 = vmax.f32 %v1548_v61, 0.0  ;;  %v1095_v36 = vmul.f32 %v1352_v6, %v2389_v10  ;;  %v708_v32 = vmul.f32 %v2489_v50, %v2338_v41 }
  0xd4   : > { %v457_v11 = vpop.f32.mrf.mxu0  ;;  %v1482_v49 = vmul.f32 %v2411_v34, %v2542_v23  ;;  %v1223_v51 = vadd.f32 %v1191_v21, %v1126_v35  ;;  %v902_v56 = vmul.f32 %v2503_v38, %v2353_v48  ;;  %651 = vst.msk [vmem:[#allocation2 + $0x150] sm:$0xff] %vm558_vm1, %v545_v45  ;;  %v1192_v50 = vmul.f32 %v2542_v23, %v2399_v17 }
  0xd5   : > { %v458_v18 = vadd.f32 %v2246_v24, %v457_v11  ;;  %v1320_v11 = vadd.f32 %v1288_v44, %v1222_v4  ;;  %v1549_v15 = vadd.f32 %v2443_v2, %v1513_v3  ;;  %v837_v26 = vadd.f32 %v805_v33, %v708_v32 }
  0xd6   : > { %v709_v5 = vmul.f32 %v2506_v46, %v2338_v41  ;;  %v806_v8 = vmul.f32 %v1352_v6, %v2340_v42 }
  0xd7   : > { %v535_v28 = vmax.f32 %v458_v18, 0.0  ;;  %v1385_v18 = vmul.f32 %v2407_v27, %v1352_v6  ;;  %v1581_v47 = vmax.f32 %v1549_v15, 0.0  ;;  %v490_v62 = vpop.f32.mrf.mxu3 }
  0xd8   : > { %v2534_v13 = vld [vmem:[#allocation2 + $0xa7] sm:$0xff]  ;;  %v491_v1 = vadd.f32 %v2246_v24, %v490_v62  ;;  %v838_v46 = vadd.f32 %v806_v8, %v709_v5 }
  0xd9   : > { %641 = vst.msk [vmem:[#allocation2 + $0xb0] sm:$0xff] %vm558_vm1, %v535_v28  ;;  %1989 = vmatmul.msk.f32.gmra.mxu1 %vm558_vm1, %v1580_v9  ;;  %v1030_v28 = vadd.f32 %v998_v43, %v933_v14  ;;  %v1417_v31 = vadd.f32 %v1385_v18, %v1320_v11  ;;  %v1289_v7 = vmul.f32 %v2403_v19, %v2534_v13  ;;  %v1353_v53 = vld [vmem:[#allocation2 + $0xa8] sm:$0xff] }
  0xda   : > { %v999_v44 = vmul.f32 %v2534_v13, %v2372_v58  ;;  %v1386_v59 = vmul.f32 %v2407_v27, %v1353_v53  ;;  %v546_v12 = vmax.f32 %v491_v1, 0.0 }
  0xdb   : > { %v1127_v55 = vadd.f32 %v1095_v36, %v1030_v28  ;;  %v1514_v60 = vadd.f32 %v1482_v49, %v1417_v31 }
  0xdc   : > { %v460_v54 = vpop.f32.mrf.mxu0  ;;  %652 = vst.msk [vmem:[#allocation2 + $0x168] sm:$0xff] %vm558_vm1, %v546_v12 }
  0xdd   : > { %v461_v57 = vadd.f32 %v2246_v24, %v460_v54  ;;  %v1224_v63 = vadd.f32 %v1192_v50, %v1127_v55  ;;  %v1550_v30 = vadd.f32 %v2443_v2, %v1514_v60  ;;  %v807_v55 = vmul.f32 %v1353_v53, %v2340_v42 }
  0xdf   : > { %v536_v0 = vmax.f32 %v461_v57, 0.0  ;;  %v1321_v57 = vadd.f32 %v1289_v7, %v1223_v51  ;;  %v1582_v22 = vmax.f32 %v1550_v30, 0.0  ;;  %v903_v7 = vmul.f32 %v2542_v23, %v2353_v48 }
  0xe0   : > { %v1257_v52 = vld [vmem:[#allocation2 + $0xaf] sm:$0xff] }
  0xe1   : > { %642 = vst.msk [vmem:[#allocation2 + $0xc8] sm:$0xff] %vm558_vm1, %v536_v0  ;;  %v2555_v54 = vld [vmem:[#allocation2 + $0xa9] sm:$0xff]  ;;  %v1290_v37 = vmul.f32 %v2403_v19, %v1257_v52  ;;  %1990 = vmatmul.msk.f32.gmra.mxu1 %vm558_vm1, %v1581_v47  ;;  %v934_v0 = vadd.f32 %v902_v56, %v837_v26  ;;  %v1418_v3 = vadd.f32 %v1386_v59, %v1321_v57  ;;  %v1451_v15 = vld [vmem:[#allocation2 + $0xb1] sm:$0xff] }
  0xe2   : > { %v1483_v38 = vmul.f32 %v2411_v34, %v2555_v54  ;;  %v1354_v4 = vld [vmem:[#allocation2 + $0xb0] sm:$0xff]  ;;  %v1193_v16 = vmul.f32 %v2555_v54, %v2399_v17  ;;  %v1000_v36 = vmul.f32 %v1257_v52, %v2372_v58  ;;  %v710_v47 = vmul.f32 %v2534_v13, %v2338_v41 }
  0xe3   : > { %v1322_v9 = vadd.f32 %v1290_v37, %v1224_v63  ;;  %v1031_v11 = vadd.f32 %v999_v44, %v934_v0  ;;  %v1387_v18 = vmul.f32 %v2407_v27, %v1354_v4  ;;  %v935_v51 = vadd.f32 %v903_v7, %v838_v46 }
  0xe4   : > { %v463_v20 = vpop.f32.mrf.mxu0  ;;  %v1515_v14 = vadd.f32 %v1483_v38, %v1418_v3  ;;  %v711_v56 = vmul.f32 %v1257_v52, %v2338_v41  ;;  %v808_v60 = vmul.f32 %v1354_v4, %v2340_v42  ;;  %v904_v38 = vmul.f32 %v2555_v54, %v2353_v48 }
  0xe5   : > { %v464_v25 = vadd.f32 %v2246_v24, %v463_v20  ;;  %v1096_v20 = vmul.f32 %v1353_v53, %v2389_v10  ;;  %v1419_v6 = vadd.f32 %v1387_v18, %v1322_v9  ;;  %v1032_v59 = vadd.f32 %v1000_v36, %v935_v51 }
  0xe6   : > { %v1551_v29 = vadd.f32 %v2443_v2, %v1515_v14  ;;  %v1097_v53 = vmul.f32 %v1354_v4, %v2389_v10  ;;  %v839_v62 = vadd.f32 %v807_v55, %v710_v47  ;;  %v840_v63 = vadd.f32 %v808_v60, %v711_v56 }
  0xe7   : > { %v537_v40 = vmax.f32 %v464_v25, 0.0  ;;  %v1484_v25 = vmul.f32 %v2411_v34, %v1451_v15  ;;  %v1128_v28 = vadd.f32 %v1096_v20, %v1031_v11  ;;  %v1194_v1 = vmul.f32 %v1451_v15, %v2399_v17 }
  0xe8   : > { %v1258_v21 = vld [vmem:[#allocation2 + $0xc7] sm:$0xff]  ;;  %v1583_v26 = vmax.f32 %v1551_v29, 0.0  ;;  %v905_v54 = vmul.f32 %v1451_v15, %v2353_v48  ;;  %v1129_v4 = vadd.f32 %v1097_v53, %v1032_v59  ;;  %v936_v8 = vadd.f32 %v904_v38, %v839_v62 }
  0xe9   : > { %643 = vst.msk [vmem:[#allocation2 + $0xd0] sm:$0xff] %vm558_vm1, %v537_v40  ;;  %1991 = vmatmul.msk.f32.gmra.mxu1 %vm558_vm1, %v1582_v22  ;;  %v1291_v35 = vmul.f32 %v2403_v19, %v1258_v21  ;;  %v493_v40 = vpop.f32.mrf.mxu3  ;;  %v1225_v32 = vadd.f32 %v1193_v16, %v1128_v28  ;;  %v1355_v49 = vld [vmem:[#allocation2 + $0xc8] sm:$0xff]  ;;  %v1516_v23 = vadd.f32 %v1484_v25, %v1419_v6 }
  0xea   : > { %v494_v33 = vadd.f32 %v2246_v24, %v493_v40  ;;  %v1388_v13 = vmul.f32 %v2407_v27, %v1355_v49  ;;  %v712_v9 = vmul.f32 %v1258_v21, %v2338_v41  ;;  %v809_v18 = vmul.f32 %v1355_v49, %v2340_v42 }
  0xeb   : > { %v1323_v44 = vadd.f32 %v1291_v35, %v1225_v32  ;;  %v1552_v0 = vadd.f32 %v2443_v2, %v1516_v23  ;;  %v937_v22 = vadd.f32 %v905_v54, %v840_v63  ;;  %v1226_v29 = vadd.f32 %v1194_v1, %v1129_v4 }
  0xec   : > { %v466_v61 = vpop.f32.mrf.mxu0  ;;  %v547_v37 = vmax.f32 %v494_v33, 0.0  ;;  %v841_v32 = vadd.f32 %v809_v18, %v712_v9 }
  0xed   : > { %v467_v39 = vadd.f32 %v2246_v24, %v466_v61  ;;  %v1420_v30 = vadd.f32 %v1388_v13, %v1323_v44  ;;  %v1584_v36 = vmax.f32 %v1552_v0, 0.0 }
  0xee   : > { %653 = vst.msk [vmem:[#allocation2 + $0x170] sm:$0xff] %vm558_vm1, %v547_v37 }
  0xef   : > { %v538_v43 = vmax.f32 %v467_v39, 0.0  ;;  %v1001_v39 = vmul.f32 %v1258_v21, %v2372_v58 }
  0xf0   : > { %v1452_v50 = vld [vmem:[#allocation2 + $0xc9] sm:$0xff]  ;;  %v1453_v40 = vld [vmem:[#allocation2 + $0xd1] sm:$0xff] }
  0xf1   : > { %644 = vst.msk [vmem:[#allocation2 + $0xe8] sm:$0xff] %vm558_vm1, %v538_v43  ;;  %v1485_v52 = vmul.f32 %v2411_v34, %v1452_v50  ;;  %v1259_v61 = vld [vmem:[#allocation2 + $0xcf] sm:$0xff]  ;;  %1992 = vmatmul.msk.f32.gmra.mxu1 %vm558_vm1, %v1583_v26  ;;  %v496_v43 = vpop.f32.mrf.mxu3  ;;  %v1033_v16 = vadd.f32 %v1001_v39, %v936_v8  ;;  %v1195_v35 = vmul.f32 %v1452_v50, %v2399_v17 }
  0xf2   : > { %v1356_v5 = vld [vmem:[#allocation2 + $0xd0] sm:$0xff]  ;;  %v497_v12 = vadd.f32 %v2246_v24, %v496_v43  ;;  %v1002_v14 = vmul.f32 %v1259_v61, %v2372_v58  ;;  %v1292_v15 = vmul.f32 %v2403_v19, %v1259_v61  ;;  %v713_v28 = vmul.f32 %v1259_v61, %v2338_v41 }
  0xf3   : > { %v1517_v20 = vadd.f32 %v1485_v52, %v1420_v30  ;;  %v810_v21 = vmul.f32 %v1356_v5, %v2340_v42  ;;  %v906_v7 = vmul.f32 %v1452_v50, %v2353_v48  ;;  %v1099_v60 = vmul.f32 %v1356_v5, %v2389_v10 }
  0xf4   : > { %v469_v31 = vpop.f32.mrf.mxu0  ;;  %v548_v25 = vmax.f32 %v497_v12, 0.0  ;;  %v1324_v33 = vadd.f32 %v1292_v15, %v1226_v29  ;;  %v1486_v50 = vmul.f32 %v2411_v34, %v1453_v40  ;;  %v907_v52 = vmul.f32 %v1453_v40, %v2353_v48 }
  0xf5   : > { %v470_v45 = vadd.f32 %v2246_v24, %v469_v31  ;;  %v1098_v31 = vmul.f32 %v1355_v49, %v2389_v10  ;;  %v1553_v56 = vadd.f32 %v2443_v2, %v1517_v20  ;;  %v842_v23 = vadd.f32 %v810_v21, %v713_v28 }
  0xf6   : > { %654 = vst.msk [vmem:[#allocation2 + $0x188] sm:$0xff] %vm558_vm1, %v548_v25  ;;  %v938_v44 = vadd.f32 %v906_v7, %v841_v32  ;;  %v1196_v63 = vmul.f32 %v1453_v40, %v2399_v17 }
  0xf7   : > { %v539_v57 = vmax.f32 %v470_v45, 0.0  ;;  %v1034_v45 = vadd.f32 %v1002_v14, %v937_v22  ;;  %v1130_v47 = vadd.f32 %v1098_v31, %v1033_v16  ;;  %v1585_v1 = vmax.f32 %v1553_v56, 0.0 }
  0xf8   : > { %v1260_v6 = vld [vmem:[#allocation2 + $0xe7] sm:$0xff] }
  0xf9   : > { %645 = vst.msk [vmem:[#allocation2 + $0xf0] sm:$0xff] %vm558_vm1, %v539_v57  ;;  %v1293_v51 = vmul.f32 %v2403_v19, %v1260_v6  ;;  %v1003_v49 = vmul.f32 %v1260_v6, %v2372_v58  ;;  %1993 = vmatmul.msk.f32.gmra.mxu1 %vm558_vm1, %v1584_v36  ;;  %v1389_v57 = vmul.f32 %v2407_v27, %v1356_v5  ;;  %v1357_v38 = vld [vmem:[#allocation2 + $0xe8] sm:$0xff] }
  0xfa   : > { %v1227_v26 = vadd.f32 %v1195_v35, %v1130_v47  ;;  %v1131_v53 = vadd.f32 %v1099_v60, %v1034_v45  ;;  %v1390_v4 = vmul.f32 %v2407_v27, %v1357_v38  ;;  %v1100_v43 = vmul.f32 %v1357_v38, %v2389_v10 }
  0xfb   : > { %v1421_v62 = vadd.f32 %v1389_v57, %v1324_v33  ;;  %v1035_v0 = vadd.f32 %v1003_v49, %v938_v44  ;;  %v714_v31 = vmul.f32 %v1260_v6, %v2338_v41  ;;  %v811_v35 = vmul.f32 %v1357_v38, %v2340_v42 }
  0xfc   : > { %v472_v3 = vpop.f32.mrf.mxu0  ;;  %v1325_v39 = vadd.f32 %v1293_v51, %v1227_v26  ;;  %v1228_v12 = vadd.f32 %v1196_v63, %v1131_v53 }
  0xfd   : > { %v473_v11 = vadd.f32 %v2246_v24, %v472_v3  ;;  %v939_v3 = vadd.f32 %v907_v52, %v842_v23  ;;  %v1518_v18 = vadd.f32 %v1486_v50, %v1421_v62  ;;  %v1132_v15 = vadd.f32 %v1100_v43, %v1035_v0 }
  0xfe   : > { %v1422_v20 = vadd.f32 %v1390_v4, %v1325_v39 }
  0xff   : > { %v540_v46 = vmax.f32 %v473_v11, 0.0  ;;  %v1554_v32 = vadd.f32 %v2443_v2, %v1518_v18 }
 0x100   : > { %v2621_v55 = vld [vmem:[#allocation2 + $0xef] sm:$0xff] }
 0x101   : > { %646 = vst.msk [vmem:[#allocation2 + $0x108] sm:$0xff] %vm558_vm1, %v540_v46  ;;  %v1454_v13 = vld [vmem:[#allocation2 + $0xe9] sm:$0xff]  ;;  %v1004_v61 = vmul.f32 %v2621_v55, %v2372_v58  ;;  %v1294_v30 = vmul.f32 %v2403_v19, %v2621_v55  ;;  %1994 = vmatmul.msk.f32.gmra.mxu1 %vm558_vm1, %v1585_v1  ;;  %v1455_v21 = vld [vmem:[#allocation2 + $0xf1] sm:$0xff]  ;;  %v715_v52 = vmul.f32 %v2621_v55, %v2338_v41  ;;  %v2667_v55 = vld [vmem:[%s3109_s2] ss:$0 sm:$0xff] }
 0x102   : > { %v1487_v5 = vmul.f32 %v2411_v34, %v1454_v13  ;;  %v1358_v8 = vld [vmem:[#allocation2 + $0xf0] sm:$0xff]  ;;  %v1197_v9 = vmul.f32 %v1454_v13, %v2399_v17  ;;  %v1198_v49 = vmul.f32 %v1455_v21, %v2399_v17  ;;  %v908_v56 = vmul.f32 %v1454_v13, %v2353_v48 }
 0x103   : > { %v1036_v14 = vadd.f32 %v1004_v61, %v939_v3  ;;  %v1326_v22 = vadd.f32 %v1294_v30, %v1228_v12  ;;  %v1101_v46 = vmul.f32 %v1358_v8, %v2389_v10  ;;  %v1391_v36 = vmul.f32 %v2407_v27, %v1358_v8  ;;  %v499_v3 = vpop.f32.mrf.mxu3 }
 0x104   : > { %v475_v37 = vpop.f32.mrf.mxu0  ;;  %v1519_v25 = vadd.f32 %v1487_v5, %v1422_v20  ;;  %v1229_v29 = vadd.f32 %v1197_v9, %v1132_v15  ;;  %v1488_v6 = vmul.f32 %v2411_v34, %v1455_v21  ;;  %v1586_v13 = vmax.f32 %v1554_v32, 0.0 }
 0x105   : > { %v476_v59 = vadd.f32 %v2246_v24, %v475_v37  ;;  %v1133_v45 = vadd.f32 %v1101_v46, %v1036_v14  ;;  %v1423_v51 = vadd.f32 %v1391_v36, %v1326_v22  ;;  %v843_v37 = vadd.f32 %v811_v35, %v714_v31 }
 0x106   : > { %v1555_v60 = vadd.f32 %v2443_v2, %v1519_v25  ;;  %v812_v61 = vmul.f32 %v1358_v8, %v2340_v42  ;;  %v909_v43 = vmul.f32 %v1455_v21, %v2353_v48  ;;  %v500_v8 = vadd.f32 %v2667_v55, %v499_v3 }
 0x107   : > { %v541_v54 = vmax.f32 %v476_v59, 0.0  ;;  %v1230_v44 = vadd.f32 %v1198_v49, %v1133_v45  ;;  %v1520_v62 = vadd.f32 %v1488_v6, %v1423_v51  ;;  %v940_v0 = vadd.f32 %v908_v56, %v843_v37 }
 0x108   : > { %v1262_v11 = vld [vmem:[#allocation2 + $0x107] sm:$0xff]  ;;  %v1587_v30 = vmax.f32 %v1555_v60, 0.0  ;;  %v844_v14 = vadd.f32 %v812_v61, %v715_v52  ;;  %v549_v22 = vmax.f32 %v500_v8, 0.0 }
 0x109   : > { %647 = vst.msk [vmem:[#allocation2 + $0x110] sm:$0xff] %vm558_vm1, %v541_v54  ;;  %v1295_v16 = vmul.f32 %v2403_v19, %v1262_v11  ;;  %v1359_v40 = vld [vmem:[#allocation2 + $0x108] sm:$0xff]  ;;  %v1005_v38 = vmul.f32 %v1262_v11, %v2372_v58  ;;  %1995 = vmatmul.msk.f32.gmra.mxu1 %vm558_vm1, %v1586_v13  ;;  %v716_v9 = vmul.f32 %v1262_v11, %v2338_v41 }
 0x10a   : > { %v1392_v23 = vmul.f32 %v2407_v27, %v1359_v40  ;;  %v813_v12 = vmul.f32 %v1359_v40, %v2340_v42  ;;  %v2673_v18 = vadd.f32 %v2443_v2, %v1520_v62  ;;  %v1102_v15 = vmul.f32 %v1359_v40, %v2389_v10  ;;  %655 = vst.msk [vmem:[#allocation2 + $0x190] sm:$0xff] %vm558_vm1, %v549_v22 }
 0x10b   : > { %v1327_v33 = vadd.f32 %v1295_v16, %v1229_v29  ;;  %v1037_v5 = vadd.f32 %v1005_v38, %v940_v0  ;;  %v941_v35 = vadd.f32 %v909_v43, %v844_v14  ;;  %v1363_v43 = vld [vmem:[#allocation2 + $0x148] sm:$0xff] }
 0x10c   : > { %v478_v28 = vpop.f32.mrf.mxu0  ;;  %v845_v31 = vadd.f32 %v813_v12, %v716_v9  ;;  %v1588_v45 = vmax.f32 %v2673_v18, 0.0  ;;  %v2725_v9 = vld [vmem:[#allocation2 + $0x14f] sm:$0xff] }
 0x10d   : > { %v479_v7 = vadd.f32 %v2246_v24, %v478_v28  ;;  %v1424_v53 = vadd.f32 %v1392_v23, %v1327_v33  ;;  %v1134_v21 = vadd.f32 %v1102_v15, %v1037_v5  ;;  %v502_v23 = vpop.f32.mrf.mxu3  ;;  %v1266_v5 = vld [vmem:[#allocation2 + $0x147] sm:$0xff]  ;;  %v1396_v15 = vmul.f32 %v2407_v27, %v1363_v43 }
 0x10f   : > { %v542_v47 = vmax.f32 %v479_v7, 0.0  ;;  %v1362_v7 = vld [vmem:[#allocation2 + $0x130] sm:$0xff] }
 0x110   : > { %v1456_v24 = vld [vmem:[#allocation2 + $0x109] sm:$0xff]  ;;  %v1457_v54 = vld [vmem:[#allocation2 + $0x111] sm:$0xff]  ;;  %v816_v14 = vmul.f32 %v1362_v7, %v2340_v42 }
 0x111   : > { %v1263_v57 = vld [vmem:[#allocation2 + $0x10f] sm:$0xff]  ;;  %648 = vst.msk [vmem:[#allocation2 + $0x128] sm:$0xff] %vm558_vm1, %v542_v47  ;;  %v1489_v26 = vmul.f32 %v2411_v34, %v1456_v24  ;;  %v1490_v20 = vmul.f32 %v2411_v34, %v1457_v54  ;;  %v1199_v16 = vmul.f32 %v1456_v24, %v2399_v17  ;;  %v910_v25 = vmul.f32 %v1456_v24, %v2353_v48 }
 0x112   : > { %v1360_v50 = vld [vmem:[#allocation2 + $0x110] sm:$0xff]  ;;  %v1296_v59 = vmul.f32 %v2403_v19, %v1263_v57  ;;  %v1006_v11 = vmul.f32 %v1263_v57, %v2372_v58  ;;  %v717_v36 = vmul.f32 %v1263_v57, %v2338_v41  ;;  %v2691_v51 = vmul.f32 %v1457_v54, %v2399_v17  ;;  %1996 = vmatmul.msk.f32.gmra.mxu1 %vm558_vm1, %v1587_v30 }
 0x113   : > { %v1393_v63 = vmul.f32 %v2407_v27, %v1360_v50  ;;  %v1521_v1 = vadd.f32 %v1489_v26, %v1424_v53  ;;  %v814_v40 = vmul.f32 %v1360_v50, %v2340_v42  ;;  %v1231_v32 = vadd.f32 %v1199_v16, %v1134_v21  ;;  %v2712_v53 = vld [vmem:[#allocation2 + $0x131] sm:$0xff]  ;;  %v2721_v30 = vld [vmem:[#allocation2 + $0x149] sm:$0xff] }
 0x114   : > { %v1328_v39 = vadd.f32 %v1296_v59, %v1230_v44  ;;  %v2688_v47 = vmul.f32 %v1360_v50, %v2389_v10  ;;  %v942_v56 = vadd.f32 %v910_v25, %v845_v31  ;;  %v2696_v6 = vadd.f32 %v1006_v11, %v941_v35 }
 0x115   : > { %v2679_v46 = vadd.f32 %v2443_v2, %v1521_v1  ;;  %v2707_v26 = vmul.f32 %v2407_v27, %v1362_v7  ;;  %v911_v44 = vmul.f32 %v1457_v54, %v2353_v48  ;;  %v503_v59 = vadd.f32 %v2667_v55, %v502_v23 }
 0x116   : > { %v1425_v4 = vadd.f32 %v1393_v63, %v1328_v39  ;;  %v846_v52 = vadd.f32 %v814_v40, %v717_v36  ;;  %v1105_v39 = vmul.f32 %v1362_v7, %v2389_v10  ;;  %v1202_v8 = vmul.f32 %v2712_v53, %v2399_v17  ;;  %v505_v7 = vpop.f32.mrf.mxu3  ;;  %v2742_v36 = vld [vmem:[#allocation2 + $0x150] sm:$0xff] }
 0x117   : > { %v1589_v49 = vmax.f32 %v2679_v46, 0.0  ;;  %v550_v0 = vmax.f32 %v503_v59, 0.0  ;;  %v1493_v22 = vmul.f32 %v2411_v34, %v2721_v30  ;;  %v1300_v31 = vmul.f32 %v2403_v19, %v2725_v9 }
 0x118   : > { %v1522_v28 = vadd.f32 %v1490_v20, %v1425_v4  ;;  %v1264_v29 = vld [vmem:[#allocation2 + $0x127] sm:$0xff]  ;;  %v2704_v37 = vld [vmem:[#allocation2 + $0x12f] sm:$0xff]  ;;  %v943_v3 = vadd.f32 %v911_v44, %v846_v52  ;;  %v1299_v20 = vmul.f32 %v2403_v19, %v1266_v5  ;;  %v1009_v35 = vmul.f32 %v1266_v5, %v2372_v58 }
 0x119   : > { %v1361_v33 = vld [vmem:[#allocation2 + $0x128] sm:$0xff]  ;;  %v1007_v60 = vmul.f32 %v1264_v29, %v2372_v58  ;;  %v1297_v57 = vmul.f32 %v2403_v19, %v1264_v29  ;;  %v1008_v62 = vmul.f32 %v2704_v37, %v2372_v58  ;;  %v718_v63 = vmul.f32 %v1264_v29, %v2338_v41  ;;  %656 = vst.msk [vmem:[#allocation2 + $0x1a8] sm:$0xff] %vm558_vm1, %v550_v0  ;;  %v1461_v44 = vld [vmem:[#allocation2 + $0x151] sm:$0xff] }
 0x11a   : > { %v2699_v24 = vadd.f32 %v2443_v2, %v1522_v28  ;;  %v2702_v50 = vld [vmem:[#allocation2 + $0x129] sm:$0xff]  ;;  %v1104_v13 = vmul.f32 %v1361_v33, %v2389_v10  ;;  %v1394_v61 = vmul.f32 %v2407_v27, %v1361_v33  ;;  %v815_v12 = vmul.f32 %v1361_v33, %v2340_v42  ;;  %1997 = vmatmul.msk.f32.gmra.mxu1 %vm558_vm1, %v1588_v45 }
 0x11b   : > { %v1039_v38 = vadd.f32 %v1007_v60, %v942_v56  ;;  %v1201_v54 = vmul.f32 %v2702_v50, %v2399_v17  ;;  %v1329_v4 = vadd.f32 %v1297_v57, %v1231_v32  ;;  %v1040_v16 = vadd.f32 %v1008_v62, %v943_v3 }
 0x11c   : > { %v847_v25 = vadd.f32 %v815_v12, %v718_v63  ;;  %v912_v11 = vmul.f32 %v2702_v50, %v2353_v48  ;;  %v719_v28 = vmul.f32 %v2704_v37, %v2338_v41  ;;  %v1106_v32 = vmul.f32 %v1363_v43, %v2389_v10 }
 0x11d   : > { %v1136_v1 = vadd.f32 %v1104_v13, %v1039_v38  ;;  %v1137_v29 = vadd.f32 %v1105_v39, %v1040_v16  ;;  %v913_v56 = vmul.f32 %v2712_v53, %v2353_v48  ;;  %v506_v60 = vadd.f32 %v2667_v55, %v505_v7 }
 0x11e   : > { %v944_v40 = vadd.f32 %v912_v11, %v847_v25  ;;  %v848_v33 = vadd.f32 %v816_v14, %v719_v28  ;;  %v1397_v57 = vmul.f32 %v2407_v27, %v2742_v36  ;;  %v1203_v38 = vmul.f32 %v2721_v30, %v2399_v17  ;;  %v1365_v25 = vld [vmem:[#allocation2 + $0x168] sm:$0xff] }
 0x11f   : > { %v1233_v18 = vadd.f32 %v1201_v54, %v1136_v1  ;;  %v1234_v23 = vadd.f32 %v1202_v8, %v1137_v29  ;;  %v1010_v52 = vmul.f32 %v2725_v9, %v2372_v58  ;;  %v551_v62 = vmax.f32 %v506_v60, 0.0  ;;  %v2755_v1 = vld [vmem:[#allocation2 + $0x167] sm:$0xff] }
 0x120   : > { %v1041_v59 = vadd.f32 %v1009_v35, %v944_v40  ;;  %v945_v13 = vadd.f32 %v913_v56, %v848_v33  ;;  %v1494_v0 = vmul.f32 %v2411_v34, %v1461_v44  ;;  %v1301_v3 = vmul.f32 %v2403_v19, %v2755_v1  ;;  %v1269_v40 = vld [vmem:[#allocation2 + $0x16f] sm:$0xff] }
 0x121   : > { %v1331_v21 = vadd.f32 %v1299_v20, %v1233_v18  ;;  %v1332_v63 = vadd.f32 %v1300_v31, %v1234_v23  ;;  %v1107_v12 = vmul.f32 %v2742_v36, %v2389_v10  ;;  %657 = vst.msk [vmem:[#allocation2 + $0x1b0] sm:$0xff] %vm558_vm1, %v551_v62  ;;  %v1426_v14 = vadd.f32 %v1394_v61, %v1329_v4 }
 0x122   : > { %v1138_v54 = vadd.f32 %v1106_v32, %v1041_v59  ;;  %v1042_v8 = vadd.f32 %v1010_v52, %v945_v13  ;;  %v1135_v20 = vadd.f32 %v2688_v47, %v2696_v6  ;;  %v1491_v16 = vmul.f32 %v2411_v34, %v2702_v50  ;;  %1998 = vmatmul.msk.f32.gmra.mxu1 %vm558_vm1, %v1589_v49  ;;  %v508_v47 = vpop.f32.mrf.mxu3  ;;  %v1462_v32 = vld [vmem:[#allocation2 + $0x169] sm:$0xff] }
 0x123   : > { %v1428_v45 = vadd.f32 %v1396_v15, %v1331_v21  ;;  %v1429_v15 = vadd.f32 %v1397_v57, %v1332_v63  ;;  %v1204_v28 = vmul.f32 %v1461_v44, %v2399_v17  ;;  %v1398_v4 = vmul.f32 %v2407_v27, %v1365_v25  ;;  %v1366_v13 = vld [vmem:[#allocation2 + $0x170] sm:$0xff]  ;;  %v2792_v52 = vld [vmem:[#allocation2 + $0x187] sm:$0xff] }
 0x124   : > { %v1139_v11 = vadd.f32 %v1107_v12, %v1042_v8  ;;  %v720_v29 = vmul.f32 %v1266_v5, %v2338_v41  ;;  %v1298_v6 = vmul.f32 %v2403_v19, %v2704_v37  ;;  %v817_v31 = vmul.f32 %v1363_v43, %v2340_v42  ;;  %v1463_v12 = vld [vmem:[#allocation2 + $0x171] sm:$0xff] }
 0x125   : > { %v1525_v39 = vadd.f32 %v1493_v22, %v1428_v45  ;;  %v1235_v22 = vadd.f32 %v1203_v38, %v1138_v54  ;;  %v1526_v61 = vadd.f32 %v1494_v0, %v1429_v15  ;;  %v914_v35 = vmul.f32 %v2721_v30, %v2353_v48 }
 0x126   : > { %v1523_v7 = vadd.f32 %v1491_v16, %v1426_v14  ;;  %v509_v46 = vadd.f32 %v2667_v55, %v508_v47  ;;  %v1232_v49 = vadd.f32 %v2691_v51, %v1135_v20  ;;  %v1492_v5 = vmul.f32 %v2411_v34, %v2712_v53 }
 0x127   : > { %v1561_v18 = vadd.f32 %v2443_v2, %v1525_v39  ;;  %v1333_v50 = vadd.f32 %v1301_v3, %v1235_v22  ;;  %v1236_v33 = vadd.f32 %v1204_v28, %v1139_v11  ;;  %v1302_v37 = vmul.f32 %v2403_v19, %v1269_v40 }
 0x128   : > { %v849_v56 = vadd.f32 %v817_v31, %v720_v29  ;;  %v1011_v43 = vmul.f32 %v2755_v1, %v2372_v58  ;;  %v552_v30 = vmax.f32 %v509_v46, 0.0  ;;  %v1562_v60 = vadd.f32 %v2443_v2, %v1526_v61 }
 0x129   : > { %v1593_v21 = vmax.f32 %v1561_v18, 0.0  ;;  %v1430_v45 = vadd.f32 %v1398_v4, %v1333_v50  ;;  %v1495_v23 = vmul.f32 %v2411_v34, %v1462_v32  ;;  %v1590_v51 = vmax.f32 %v2699_v24, 0.0 }
 0x12a   : > { %v1330_v57 = vadd.f32 %v1298_v6, %v1232_v49  ;;  %v946_v59 = vadd.f32 %v914_v35, %v849_v56  ;;  %v1108_v53 = vmul.f32 %v1365_v25, %v2389_v10  ;;  %v1559_v38 = vadd.f32 %v2443_v2, %v1523_v7  ;;  %658 = vst.msk [vmem:[#allocation2 + $0x1c8] sm:$0xff] %vm558_vm1, %v552_v30  ;;  %v511_v20 = vpop.f32.mrf.mxu3  ;;  %v2817_v6 = vld [vmem:[%s3111_s4] ss:$0 sm:$0xff]  ;;  %v1464_v49 = vld [vmem:[#allocation2 + $0x189] sm:$0xff] }
 0x12b   : > { %2002 = vmatmul.msk.f32.vlgmr.msra.gmra.mxu2 %vm558_vm1, %v1593_v21  ;;  %v721_v62 = vmul.f32 %v2725_v9, %v2338_v41  ;;  %v818_v39 = vmul.f32 %v2742_v36, %v2340_v42  ;;  %v915_v63 = vmul.f32 %v1461_v44, %v2353_v48  ;;  %v1334_v24 = vadd.f32 %v1302_v37, %v1236_v33  ;;  %v2825_v56 = vld [vmem:[#allocation2 + $0x18f] sm:$0xff] }
 0x12c   : > { %v1399_v0 = vmul.f32 %v2407_v27, %v1366_v13  ;;  %v1043_v54 = vadd.f32 %v1011_v43, %v946_v59  ;;  %v1205_v3 = vmul.f32 %v1462_v32, %v2399_v17  ;;  %1999 = vmatmul.msk.f32.gmra.mxu1 %vm558_vm1, %v1590_v51  ;;  %v1594_v2 = vmax.f32 %v1562_v60, 0.0 }
 0x12d   : > { %v1527_v8 = vadd.f32 %v1495_v23, %v1430_v45  ;;  %v850_v14 = vadd.f32 %v818_v39, %v721_v62  ;;  %v1012_v18 = vmul.f32 %v1269_v40, %v2372_v58  ;;  %v1427_v9 = vadd.f32 %v2707_v26, %v1330_v57  ;;  %v1367_v26 = vld [vmem:[#allocation2 + $0x188] sm:$0xff]  ;;  %v1368_v62 = vld [vmem:[#allocation2 + $0x190] sm:$0xff] }
 0x12e   : > { %v1496_v36 = vmul.f32 %v2411_v34, %v1463_v12  ;;  %v1140_v44 = vadd.f32 %v1108_v53, %v1043_v54  ;;  %v1303_v15 = vmul.f32 %v2403_v19, %v2792_v52  ;;  %v512_v16 = vadd.f32 %v2667_v55, %v511_v20 }
 0x12f   : > { %v947_v22 = vadd.f32 %v915_v63, %v850_v14  ;;  %v722_v11 = vmul.f32 %v2755_v1, %v2338_v41  ;;  %v819_v28 = vmul.f32 %v1365_v25, %v2340_v42  ;;  %v1431_v21 = vadd.f32 %v1399_v0, %v1334_v24 }
 0x130   : > { %v1237_v61 = vadd.f32 %v1205_v3, %v1140_v44  ;;  %v1109_v4 = vmul.f32 %v1366_v13, %v2389_v10  ;;  %v916_v29 = vmul.f32 %v1462_v32, %v2353_v48  ;;  %v553_v47 = vmax.f32 %v512_v16, 0.0 }
 0x131   : > { %v1563_v50 = vadd.f32 %v2817_v6, %v1527_v8  ;;  %v1044_v31 = vadd.f32 %v1012_v18, %v947_v22  ;;  %v851_v35 = vadd.f32 %v819_v28, %v722_v11  ;;  %v1591_v1 = vmax.f32 %v1559_v38, 0.0  ;;  %v2851_v28 = vld [vmem:[%s3113_s6] ss:$0 sm:$0xff] }
 0x132   : > { %v1524_v7 = vadd.f32 %v1492_v5, %v1427_v9  ;;  %659 = vst.msk [vmem:[#allocation2 + $0x1d0] sm:$0xff] %vm558_vm1, %v553_v47  ;;  %v1335_v25 = vadd.f32 %v1303_v15, %v1237_v61  ;;  %v1400_v46 = vmul.f32 %v2407_v27, %v1367_v26  ;;  %v1206_v32 = vmul.f32 %v1463_v12, %v2399_v17  ;;  %v514_v51 = vpop.f32.mrf.mxu3  ;;  %v1465_v9 = vld [vmem:[#allocation2 + $0x191] sm:$0xff] }
 0x133   : > { %2003 = vmatmul.msk.f32.gmra.mxu2 %vm558_vm1, %v1594_v2  ;;  %v1013_v33 = vmul.f32 %v2792_v52, %v2372_v58  ;;  %v1141_v37 = vadd.f32 %v1109_v4, %v1044_v31  ;;  %v948_v43 = vadd.f32 %v916_v29, %v851_v35  ;;  %v723_v30 = vmul.f32 %v1269_v40, %v2338_v41 }
 0x134   : > { %v820_v60 = vmul.f32 %v1366_v13, %v2340_v42  ;;  %2000 = vmatmul.msk.f32.gmra.mxu1 %vm558_vm1, %v1591_v1  ;;  %v1595_v5 = vmax.f32 %v1563_v50, 0.0  ;;  %v1528_v45 = vadd.f32 %v1496_v36, %v1431_v21  ;;  %v1560_v23 = vadd.f32 %v2817_v6, %v1524_v7  ;;  %v1272_v36 = vld [vmem:[#allocation2 + $0x1a7] sm:$0xff] }
 0x135   : > { %v1497_v57 = vmul.f32 %v2411_v34, %v1464_v49  ;;  %v515_v59 = vadd.f32 %v2667_v55, %v514_v51  ;;  %v1432_v53 = vadd.f32 %v1400_v46, %v1335_v25  ;;  %v1304_v38 = vmul.f32 %v2403_v19, %v2825_v56 }
 0x136   : > { %v1110_v40 = vmul.f32 %v1367_v26, %v2389_v10  ;;  %v1238_v13 = vadd.f32 %v1206_v32, %v1141_v37  ;;  %v1045_v39 = vadd.f32 %v1013_v33, %v948_v43  ;;  %v852_v63 = vadd.f32 %v820_v60, %v723_v30 }
 0x137   : > { %v917_v24 = vmul.f32 %v1463_v12, %v2353_v48  ;;  %v554_v0 = vmax.f32 %v515_v59, 0.0  ;;  %v1564_v54 = vadd.f32 %v2817_v6, %v1528_v45  ;;  %v1592_v3 = vmax.f32 %v1560_v23, 0.0  ;;  %v2041_v23 = vld [vmem:[%s2141_s8] sm:$0xff] }
 0x138   : > { %v1529_v2 = vadd.f32 %v1497_v57, %v1432_v53  ;;  %v1401_v8 = vmul.f32 %v2407_v27, %v1368_v62  ;;  %v1207_v14 = vmul.f32 %v1464_v49, %v2399_v17  ;;  %v1336_v18 = vadd.f32 %v1304_v38, %v1238_v13 }
 0x139   : > { %660 = vst.msk [vmem:[#allocation2 + $0x1e8] sm:$0xff] %vm558_vm1, %v554_v0  ;;  %v1142_v20 = vadd.f32 %v1110_v40, %v1045_v39  ;;  %v949_v44 = vadd.f32 %v917_v24, %v852_v63  ;;  %v1014_v15 = vmul.f32 %v2825_v56, %v2372_v58  ;;  %v1596_v12 = vmax.f32 %v1564_v54, 0.0  ;;  %v1370_v0 = vld [vmem:[#allocation2 + $0x1b0] sm:$0xff] }
 0x13a   : > { %v724_v16 = vmul.f32 %v2792_v52, %v2338_v41  ;;  %v821_v22 = vmul.f32 %v1367_v26, %v2340_v42  ;;  %v517_v11 = vpop.f32.mrf.mxu3  ;;  %v1565_v61 = vadd.f32 %v2817_v6, %v1529_v2  ;;  %v1498_v4 = vmul.f32 %v2411_v34, %v1465_v9  ;;  %v1369_v26 = vld [vmem:[#allocation2 + $0x1a8] sm:$0xff] }
 0x13b   : > { %2004 = vmatmul.msk.f32.gmra.mxu2 %vm558_vm1, %v1595_v5  ;;  %v518_v21 = vadd.f32 %v2667_v55, %v517_v11  ;;  %v1305_v29 = vmul.f32 %v2403_v19, %v1272_v36  ;;  %v1433_v52 = vadd.f32 %v1401_v8, %v1336_v18  ;;  %v1239_v47 = vadd.f32 %v1207_v14, %v1142_v20  ;;  %v1273_v5 = vld [vmem:[#allocation2 + $0x1af] sm:$0xff] }
 0x13c   : > { %2001 = vmatmul.msk.f32.gmra.mxu1 %vm558_vm1, %v1592_v3  ;;  %v1046_v50 = vadd.f32 %v1014_v15, %v949_v44  ;;  %v1111_v31 = vmul.f32 %v1368_v62, %v2389_v10  ;;  %v853_v1 = vadd.f32 %v821_v22, %v724_v16  ;;  %v918_v7 = vmul.f32 %v1464_v49, %v2353_v48  ;;  %v1466_v49 = vld [vmem:[#allocation2 + $0x1a9] sm:$0xff] }
 0x13d   : > { %v555_v35 = vmax.f32 %v518_v21, 0.0  ;;  %v1597_v32 = vmax.f32 %v1565_v61, 0.0  ;;  %v1402_v33 = vmul.f32 %v2407_v27, %v1369_v26  ;;  %v1208_v37 = vmul.f32 %v1465_v9, %v2399_v17  ;;  %v2042_v11 = vld [vmem:[%s2141_s8 + $0x8] sm:$0xff] }
 0x13e   : > { %v1730_v25 = vpop.f32.mrf.mxu1  ;;  %v1530_v43 = vadd.f32 %v1498_v4, %v1433_v52  ;;  %v1337_v30 = vadd.f32 %v1305_v29, %v1239_v47  ;;  %v1143_v60 = vadd.f32 %v1111_v31, %v1046_v50  ;;  %v1015_v45 = vmul.f32 %v1272_v36, %v2372_v58  ;;  %v1467_v4 = vld [vmem:[#allocation2 + $0x1b1] sm:$0xff]  ;;  %v1274_v52 = vld [vmem:[#allocation2 + $0x1c7] sm:$0xff] }
 0x13f   : > { %v1731_v46 = vadd.f32 %v2851_v28, %v1730_v25  ;;  %661 = vst.msk [vmem:[#allocation2 + $0x1f0] sm:$0xff] %vm558_vm1, %v555_v35  ;;  %v950_v57 = vadd.f32 %v918_v7, %v853_v1  ;;  %v725_v59 = vmul.f32 %v2825_v56, %v2338_v41  ;;  %v822_v53 = vmul.f32 %v1368_v62, %v2340_v42 }
 0x140   : > { %v1499_v13 = vmul.f32 %v2411_v34, %v1466_v49  ;;  %v1306_v39 = vmul.f32 %v2403_v19, %v1273_v5  ;;  %v1566_v63 = vadd.f32 %v2817_v6, %v1530_v43  ;;  %v1434_v24 = vadd.f32 %v1402_v33, %v1337_v30 }
 0x141   : > { %v1826_v51 = vadd.f32 %v2041_v23, %v1731_v46  ;;  %v1112_v54 = vmul.f32 %v1369_v26, %v2389_v10  ;;  %v919_v56 = vmul.f32 %v1465_v9, %v2353_v48  ;;  %v1240_v3 = vadd.f32 %v1208_v37, %v1143_v60  ;;  %v1371_v37 = vld [vmem:[#allocation2 + $0x1c8] sm:$0xff] }
 0x142   : > { %v520_v38 = vpop.f32.mrf.mxu3  ;;  %v1047_v2 = vadd.f32 %v1015_v45, %v950_v57  ;;  %v854_v8 = vadd.f32 %v822_v53, %v725_v59  ;;  %v1403_v20 = vmul.f32 %v2407_v27, %v1370_v0  ;;  %v726_v44 = vmul.f32 %v1272_v36, %v2338_v41  ;;  %v2043_v53 = vld [vmem:[%s2141_s8 + $0x10] sm:$0xff] }
 0x143   : > { %2005 = vmatmul.msk.f32.gmra.mxu2 %vm558_vm1, %v1596_v12  ;;  %1858 = vst.msk [vmem:[%s2869_s16] sm:$0xff] %vm316_vm0, %v1826_v51  ;;  %v521_v40 = vadd.f32 %v2667_v55, %v520_v38  ;;  %v823_v15 = vmul.f32 %v1369_v26, %v2340_v42  ;;  %v1598_v12 = vmax.f32 %v1566_v63, 0.0  ;;  %v1531_v16 = vadd.f32 %v1499_v13, %v1434_v24  ;;  %v1468_v63 = vld [vmem:[#allocation2 + $0x1c9] sm:$0xff] }
 0x144   : > { %v1209_v9 = vmul.f32 %v1466_v49, %v2399_v17  ;;  %v1016_v22 = vmul.f32 %v1273_v5, %v2372_v58  ;;  %v1338_v61 = vadd.f32 %v1306_v39, %v1240_v3  ;;  %v1144_v29 = vadd.f32 %v1112_v54, %v1047_v2  ;;  %v1275_v39 = vld [vmem:[#allocation2 + $0x1cf] sm:$0xff] }
 0x145   : > { %v556_v62 = vmax.f32 %v521_v40, 0.0  ;;  %v951_v47 = vadd.f32 %v919_v56, %v854_v8  ;;  %v855_v26 = vadd.f32 %v823_v15, %v726_v44  ;;  %v920_v31 = vmul.f32 %v1466_v49, %v2353_v48 }
 0x146   : > { %v1733_v14 = vpop.f32.mrf.mxu1  ;;  %v1567_v35 = vadd.f32 %v2817_v6, %v1531_v16  ;;  %v1500_v1 = vmul.f32 %v2411_v34, %v1467_v4  ;;  %v1307_v7 = vmul.f32 %v2403_v19, %v1274_v52  ;;  %v1113_v25 = vmul.f32 %v1370_v0, %v2389_v10 }
 0x147   : > { %v1734_v18 = vadd.f32 %v2851_v28, %v1733_v14  ;;  %662 = vst.msk [vmem:[#allocation2 + $0x208] sm:$0xff] %vm558_vm1, %v556_v62  ;;  %v1241_v33 = vadd.f32 %v1209_v9, %v1144_v29  ;;  %v1048_v43 = vadd.f32 %v1016_v22, %v951_v47  ;;  %v824_v60 = vmul.f32 %v1370_v0, %v2340_v42 }
 0x148   : > { %v952_v45 = vadd.f32 %v920_v31, %v855_v26  ;;  %v1017_v23 = vmul.f32 %v1274_v52, %v2372_v58  ;;  %v1599_v51 = vmax.f32 %v1567_v35, 0.0  ;;  %v1404_v57 = vmul.f32 %v2407_v27, %v1371_v37  ;;  %v1469_v26 = vld [vmem:[#allocation2 + $0x1d1] sm:$0xff] }
 0x149   : > { %v1827_v21 = vadd.f32 %v2042_v11, %v1734_v18  ;;  %v1210_v59 = vmul.f32 %v1467_v4, %v2399_v17  ;;  %v1339_v13 = vadd.f32 %v1307_v7, %v1241_v33  ;;  %v921_v0 = vmul.f32 %v1467_v4, %v2353_v48  ;;  %v1372_v18 = vld [vmem:[#allocation2 + $0x1d0] sm:$0xff]  ;;  %v2922_v11 = vld [vmem:[#allocation2 + $0x1e7] sm:$0xff]  ;;  %v2044_v4 = vld [vmem:[%s2141_s8 + $0x18] sm:$0xff] }
 0x14a   : > { %v523_v50 = vpop.f32.mrf.mxu3  ;;  %v1049_v54 = vadd.f32 %v1017_v23, %v952_v45  ;;  %v1114_v56 = vmul.f32 %v1371_v37, %v2389_v10  ;;  %v1308_v62 = vmul.f32 %v2403_v19, %v1275_v39  ;;  %v1501_v8 = vmul.f32 %v2411_v34, %v1468_v63  ;;  %v1470_v23 = vld [vmem:[#allocation2 + $0x1e9] sm:$0xff] }
 0x14b   : > { %2006 = vmatmul.msk.f32.gmra.mxu2 %vm558_vm1, %v1597_v32  ;;  %1859 = vst.msk [vmem:[%s2869_s16 + $0x8] sm:$0xff] %vm316_vm0, %v1827_v21  ;;  %v524_v36 = vadd.f32 %v2667_v55, %v523_v50  ;;  %v1435_v32 = vadd.f32 %v1403_v20, %v1338_v61  ;;  %v727_v55 = vmul.f32 %v1273_v5, %v2338_v41 }
 0x14c   : > { %v1145_v5 = vadd.f32 %v1113_v25, %v1048_v43  ;;  %v1436_v2 = vadd.f32 %v1404_v57, %v1339_v13  ;;  %v1018_v15 = vmul.f32 %v1275_v39, %v2372_v58  ;;  %v1146_v16 = vadd.f32 %v1114_v56, %v1049_v54  ;;  %v1374_v56 = vld [vmem:[#allocation2 + $0x1f0] sm:$0xff] }
 0x14d   : > { %v557_v46 = vmax.f32 %v524_v36, 0.0  ;;  %v1532_v40 = vadd.f32 %v1500_v1, %v1435_v32  ;;  %v856_v24 = vadd.f32 %v824_v60, %v727_v55  ;;  %v1211_v9 = vmul.f32 %v1468_v63, %v2399_v17 }
 0x14e   : > { %v1736_v30 = vpop.f32.mrf.mxu1  ;;  %v1242_v14 = vadd.f32 %v1210_v59, %v1145_v5  ;;  %v1405_v22 = vmul.f32 %v2407_v27, %v1372_v18  ;;  %v728_v21 = vmul.f32 %v1274_v52, %v2338_v41  ;;  %v825_v61 = vmul.f32 %v1371_v37, %v2340_v42  ;;  %v1373_v52 = vld [vmem:[#allocation2 + $0x1e8] sm:$0xff] }
 0x14f   : > { %v1737_v49 = vadd.f32 %v2851_v28, %v1736_v30  ;;  %663 = vst.msk [vmem:[#allocation2 + $0x210] sm:$0xff] %vm558_vm1, %v557_v46  ;;  %v1568_v3 = vadd.f32 %v2817_v6, %v1532_v40  ;;  %v953_v44 = vadd.f32 %v921_v0, %v856_v24  ;;  %v1533_v50 = vadd.f32 %v1501_v8, %v1436_v2  ;;  %v2045_v40 = vld [vmem:[%s2141_s8 + $0x20] sm:$0xff] }
 0x150   : > { %v1340_v36 = vadd.f32 %v1308_v62, %v1242_v14  ;;  %v1115_v35 = vmul.f32 %v1372_v18, %v2389_v10  ;;  %v1243_v1 = vadd.f32 %v1211_v9, %v1146_v16  ;;  %v1309_v7 = vmul.f32 %v2403_v19, %v2922_v11  ;;  %v1471_v16 = vld [vmem:[#allocation2 + $0x1f1] sm:$0xff] }
 0x151   : > { %v1828_v38 = vadd.f32 %v2043_v53, %v1737_v49  ;;  %v1600_v47 = vmax.f32 %v1568_v3, 0.0  ;;  %v1050_v31 = vadd.f32 %v1018_v15, %v953_v44  ;;  %v857_v25 = vadd.f32 %v825_v61, %v728_v21 }
 0x152   : > { %v922_v46 = vmul.f32 %v1468_v63, %v2353_v48  ;;  %v1569_v32 = vadd.f32 %v2817_v6, %v1533_v50  ;;  %v1437_v33 = vadd.f32 %v1405_v22, %v1340_v36  ;;  %v1502_v37 = vmul.f32 %v2411_v34, %v1469_v26  ;;  %v1278_v50 = vld [vmem:[#allocation2 + $0x207] sm:$0xff] }
 0x153   : > { %2007 = vmatmul.msk.f32.gmra.mxu2 %vm558_vm1, %v1598_v12  ;;  %1860 = vst.msk [vmem:[%s2869_s16 + $0x10] sm:$0xff] %vm316_vm0, %v1828_v38  ;;  %v1406_v30 = vmul.f32 %v2407_v27, %v1373_v52  ;;  %v1147_v55 = vadd.f32 %v1115_v35, %v1050_v31  ;;  %v1212_v60 = vmul.f32 %v1469_v26, %v2399_v17 }
 0x154   : > { %v1341_v45 = vadd.f32 %v1309_v7, %v1243_v1  ;;  %v729_v57 = vmul.f32 %v1275_v39, %v2338_v41  ;;  %v826_v59 = vmul.f32 %v1372_v18, %v2340_v42  ;;  %v954_v53 = vadd.f32 %v922_v46, %v857_v25 }
 0x155   : > { %v1019_v38 = vmul.f32 %v2922_v11, %v2372_v58  ;;  %v1601_v5 = vmax.f32 %v1569_v32, 0.0  ;;  %v1534_v63 = vadd.f32 %v1502_v37, %v1437_v33  ;;  %v1503_v24 = vmul.f32 %v2411_v34, %v1470_v23  ;;  %v1375_v33 = vld [vmem:[#allocation2 + $0x208] sm:$0xff] }
 0x156   : > { %v1739_v20 = vpop.f32.mrf.mxu1  ;;  %v1244_v0 = vadd.f32 %v1212_v60, %v1147_v55  ;;  %v1438_v39 = vadd.f32 %v1406_v30, %v1341_v45  ;;  %v858_v62 = vadd.f32 %v826_v59, %v729_v57  ;;  %v923_v3 = vmul.f32 %v1469_v26, %v2353_v48 }
 0x157   : > { %v1740_v12 = vadd.f32 %v2851_v28, %v1739_v20  ;;  %v1051_v2 = vadd.f32 %v1019_v38, %v954_v53  ;;  %v1116_v8 = vmul.f32 %v1373_v52, %v2389_v10  ;;  %v1570_v14 = vadd.f32 %v2817_v6, %v1534_v63  ;;  %v2047_v53 = vld [vmem:[%s2141_s8 + $0x30] sm:$0xff] }
 0x158   : > { %v1407_v44 = vmul.f32 %v2407_v27, %v1374_v56  ;;  %v955_v9 = vadd.f32 %v923_v3, %v858_v62  ;;  %v1213_v61 = vmul.f32 %v1470_v23, %v2399_v17  ;;  %v730_v36 = vmul.f32 %v2922_v11, %v2338_v41 }
 0x159   : > { %v1829_v29 = vadd.f32 %v2044_v4, %v1740_v12  ;;  %v1535_v12 = vadd.f32 %v1503_v24, %v1438_v39  ;;  %v1148_v21 = vadd.f32 %v1116_v8, %v1051_v2  ;;  %v2046_v4 = vld [vmem:[%s2141_s8 + $0x28] sm:$0xff]  ;;  %v827_v26 = vmul.f32 %v1373_v52, %v2340_v42  ;;  %v1376_v39 = vld [vmem:[#allocation2 + $0x210] sm:$0xff] }
 0x15a   : > { %v1504_v35 = vmul.f32 %v2411_v34, %v1471_v16  ;;  %v1117_v25 = vmul.f32 %v1374_v56, %v2389_v10  ;;  %v1311_v32 = vmul.f32 %v2403_v19, %v1278_v50  ;;  %v924_v52 = vmul.f32 %v1470_v23, %v2353_v48 }
 0x15b   : > { %2008 = vmatmul.msk.f32.gmra.mxu2 %vm558_vm1, %v1599_v51  ;;  %1861 = vst.msk [vmem:[%s2869_s16 + $0x18] sm:$0xff] %vm316_vm0, %v1829_v29  ;;  %v1277_v51 = vld [vmem:[#allocation2 + $0x1ef] sm:$0xff]  ;;  %v1571_v1 = vadd.f32 %v2817_v6, %v1535_v12  ;;  %v1245_v46 = vadd.f32 %v1213_v61, %v1148_v21  ;;  %v859_v11 = vadd.f32 %v827_v26, %v730_v36  ;;  %v2048_v12 = vld [vmem:[%s2141_s8 + $0x38] sm:$0xff] }
 0x15c   : > { %v1310_v54 = vmul.f32 %v2403_v19, %v1277_v51  ;;  %v1020_v22 = vmul.f32 %v1277_v51, %v2372_v58  ;;  %v1408_v45 = vmul.f32 %v2407_v27, %v1375_v33  ;;  %v1214_v57 = vmul.f32 %v1471_v16, %v2399_v17 }
 0x15d   : > { %v1603_v30 = vmax.f32 %v1571_v1, 0.0  ;;  %v731_v59 = vmul.f32 %v1277_v51, %v2338_v41  ;;  %v1021_v23 = vmul.f32 %v1278_v50, %v2372_v58  ;;  %v828_v63 = vmul.f32 %v1374_v56, %v2340_v42 }
 0x15e   : > { %v1742_v43 = vpop.f32.mrf.mxu1  ;;  %v1342_v20 = vadd.f32 %v1310_v54, %v1244_v0  ;;  %v1052_v7 = vadd.f32 %v1020_v22, %v955_v9  ;;  %v1118_v3 = vmul.f32 %v1375_v33, %v2389_v10  ;;  %v925_v42 = vmul.f32 %v1471_v16, %v2353_v48  ;;  %v1473_v22 = vld [vmem:[#allocation2 + $0x211] sm:$0xff] }
 0x15f   : > { %v1743_v49 = vadd.f32 %v2851_v28, %v1742_v43  ;;  %v860_v2 = vadd.f32 %v828_v63, %v731_v59  ;;  %v1119_v26 = vmul.f32 %v1376_v39, %v2389_v10  ;;  %v1475_v63 = vld [vmem:[#allocation2 + $0x231] sm:$0xff] }
 0x160   : > { %v1439_v31 = vadd.f32 %v1407_v44, %v1342_v20  ;;  %v1149_v60 = vadd.f32 %v1117_v25, %v1052_v7  ;;  %v1409_v44 = vmul.f32 %v2407_v27, %v1376_v39 }
 0x161   : > { %v1830_v13 = vadd.f32 %v2045_v40, %v1743_v49  ;;  %v1343_v49 = vadd.f32 %v1311_v32, %v1245_v46  ;;  %v1472_v40 = vld [vmem:[#allocation2 + $0x209] sm:$0xff]  ;;  %v1216_v46 = vmul.f32 %v1473_v22, %v2399_v17  ;;  %v2049_v32 = vld [vmem:[%s2141_s8 + $0x40] sm:$0xff] }
 0x162   : > { %v1536_v55 = vadd.f32 %v1504_v35, %v1439_v31  ;;  %v1505_v54 = vmul.f32 %v2411_v34, %v1472_v40  ;;  %v1246_v41 = vadd.f32 %v1214_v57, %v1149_v60  ;;  %v1215_v61 = vmul.f32 %v1472_v40, %v2399_v17  ;;  %v1377_v35 = vld [vmem:[#allocation2 + $0x228] sm:$0xff]  ;;  %v1378_v57 = vld [vmem:[#allocation2 + $0x230] sm:$0xff] }
 0x163   : > { %2009 = vmatmul.msk.f32.gmra.mxu2 %vm558_vm1, %v1600_v47  ;;  %1862 = vst.msk [vmem:[%s2869_s16 + $0x20] sm:$0xff] %vm316_vm0, %v1830_v13  ;;  %v1602_v47 = vmax.f32 %v1570_v14, 0.0  ;;  %v1279_v13 = vld [vmem:[#allocation2 + $0x20f] sm:$0xff]  ;;  %v1440_v0 = vadd.f32 %v1408_v45, %v1343_v49 }
 0x164   : > { %v1572_v24 = vadd.f32 %v2817_v6, %v1536_v55  ;;  %v1312_v51 = vmul.f32 %v2403_v19, %v1279_v13 }
 0x166   : > { %v1745_v18 = vpop.f32.mrf.mxu1  ;;  %v1604_v14 = vmax.f32 %v1572_v24, 0.0  ;;  %v1344_v20 = vadd.f32 %v1312_v51, %v1246_v41  ;;  %v2051_v51 = vld [vmem:[%s2141_s8 + $0x50] sm:$0xff] }
 0x167   : > { %v1746_v15 = vadd.f32 %v2851_v28, %v1745_v18  ;;  %v1537_v18 = vadd.f32 %v1505_v54, %v1440_v0  ;;  %v1508_v0 = vmul.f32 %v2411_v34, %v1475_v63 }
 0x168   : > { %v1441_v16 = vadd.f32 %v1409_v44, %v1344_v20  ;;  %v2053_v20 = vld [vmem:[%s2141_s8 + $0x60] sm:$0xff] }
 0x169   : > { %v1831_v29 = vadd.f32 %v2046_v4, %v1746_v15  ;;  %v1022_v15 = vmul.f32 %v1279_v13, %v2372_v58  ;;  %v957_v4 = vadd.f32 %v925_v42, %v860_v2  ;;  %v1573_v48 = vadd.f32 %v2817_v6, %v1537_v18 }
 0x16b   : > { %2010 = vmatmul.msk.f32.gmra.mxu2 %vm558_vm1, %v1601_v5  ;;  %1863 = vst.msk [vmem:[%s2869_s16 + $0x28] sm:$0xff] %vm316_vm0, %v1831_v29  ;;  %v956_v5 = vadd.f32 %v924_v52, %v859_v11  ;;  %v1280_v29 = vld [vmem:[#allocation2 + $0x227] sm:$0xff]  ;;  %v1054_v36 = vadd.f32 %v1022_v15, %v957_v4  ;;  %v1605_v7 = vmax.f32 %v1573_v48, 0.0  ;;  %v1410_v52 = vmul.f32 %v2407_v27, %v1377_v35 }
 0x16c   : > { %v1313_v58 = vmul.f32 %v2403_v19, %v1280_v29 }
 0x16d   : > { %v1053_v62 = vadd.f32 %v1021_v23, %v956_v5  ;;  %v1411_v23 = vmul.f32 %v2407_v27, %v1378_v57 }
 0x16e   : > { %v1748_v37 = vpop.f32.mrf.mxu1 }
 0x16f   : > { %v1749_v43 = vadd.f32 %v2851_v28, %v1748_v37  ;;  %v1150_v21 = vadd.f32 %v1118_v3, %v1053_v62  ;;  %v1151_v37 = vadd.f32 %v1119_v26, %v1054_v36  ;;  %v2057_v36 = vld [vmem:[%s2141_s8 + $0x88] sm:$0xff] }
 0x171   : > { %v1832_v38 = vadd.f32 %v2047_v53, %v1749_v43  ;;  %v1247_v50 = vadd.f32 %v1215_v61, %v1150_v21  ;;  %v1474_v43 = vld [vmem:[#allocation2 + $0x229] sm:$0xff]  ;;  %v1248_v17 = vadd.f32 %v1216_v46, %v1151_v37  ;;  %v2055_v61 = vld [vmem:[%s2141_s8 + $0x80] sm:$0xff]  ;;  %v2060_v37 = vld [vmem:[%s2141_s8 + $0x98] sm:$0xff] }
 0x172   : > { %v1507_v60 = vmul.f32 %v2411_v34, %v1474_v43 }
 0x173   : > { %2011 = vmatmul.msk.f32.gmra.mxu2 %vm558_vm1, %v1602_v47  ;;  %1864 = vst.msk [vmem:[%s2869_s16 + $0x30] sm:$0xff] %vm316_vm0, %v1832_v38  ;;  %v1506_v47 = vmul.f32 %v2411_v34, %v1473_v22  ;;  %v1345_v11 = vadd.f32 %v1313_v58, %v1247_v50  ;;  %v2050_v38 = vld [vmem:[%s2141_s8 + $0x48] sm:$0xff]  ;;  %v2052_v34 = vld [vmem:[%s2141_s8 + $0x58] sm:$0xff]  ;;  %v2056_v50 = vld [vmem:[%s2141_s8 + $0x70] sm:$0xff] }
 0x174   : > { %v2054_v22 = vld [vmem:[%s2141_s8 + $0x68] sm:$0xff] }
 0x175   : > { %v1538_v25 = vadd.f32 %v1506_v47, %v1441_v16  ;;  %v1442_v55 = vadd.f32 %v1410_v52, %v1345_v11 }
 0x176   : > { %v1751_v56 = vpop.f32.mrf.mxu1 }
 0x177   : > { %v1752_v8 = vadd.f32 %v2851_v28, %v1751_v56  ;;  %v1574_v10 = vadd.f32 %v2817_v6, %v1538_v25  ;;  %v1539_v13 = vadd.f32 %v1507_v60, %v1442_v55  ;;  %v2058_v25 = vld [vmem:[%s2141_s8 + $0x78] sm:$0xff]  ;;  %v2061_v55 = vld [vmem:[%s2141_s8 + $0xa0] sm:$0xff] }
 0x179   : > { %v1833_v9 = vadd.f32 %v2048_v12, %v1752_v8  ;;  %v1606_v53 = vmax.f32 %v1574_v10, 0.0 }
 0x17b   : > { %2012 = vmatmul.msk.f32.gmra.mxu2 %vm558_vm1, %v1603_v30  ;;  %1865 = vst.msk [vmem:[%s2869_s16 + $0x38] sm:$0xff] %vm316_vm0, %v1833_v9  ;;  %v1281_v30 = vld [vmem:[#allocation2 + $0x22f] sm:$0xff] }
 0x17c   : > { %v1314_v49 = vmul.f32 %v2403_v19, %v1281_v30  ;;  %v1575_v19 = vadd.f32 %v2817_v6, %v1539_v13 }
 0x17e   : > { %v1754_v31 = vpop.f32.mrf.mxu1  ;;  %v1346_v5 = vadd.f32 %v1314_v49, %v1248_v17  ;;  %v1607_v62 = vmax.f32 %v1575_v19, 0.0 }
 0x17f   : > { %v1755_v1 = vadd.f32 %v2851_v28, %v1754_v31 }
 0x180   : > { %v1443_v24 = vadd.f32 %v1411_v23, %v1346_v5  ;;  %v2064_v23 = vld [vmem:[%s2141_s8 + $0xb8] sm:$0xff] }
 0x181   : > { %v1834_v33 = vadd.f32 %v2049_v32, %v1755_v1  ;;  %v2059_v32 = vld [vmem:[%s2141_s8 + $0x90] sm:$0xff] }
 0x182   : > { %v1540_v27 = vadd.f32 %v1508_v0, %v1443_v24  ;;  %v2065_v0 = vld [vmem:[%s2141_s8 + $0xc0] sm:$0xff] }
 0x183   : > { %2013 = vmatmul.msk.f32.gmra.mxu2 %vm558_vm1, %v1604_v14  ;;  %1866 = vst.msk [vmem:[%s2869_s16 + $0x40] sm:$0xff] %vm316_vm0, %v1834_v33 }
 0x184   : > { %v1576_v3 = vadd.f32 %v2817_v6, %v1540_v27 }
 0x186   : > { %v1757_v45 = vpop.f32.mrf.mxu1  ;;  %v1608_v8 = vmax.f32 %v1576_v3, 0.0 }
 0x187   : > { %v1758_v59 = vadd.f32 %v2851_v28, %v1757_v45  ;;  %v2062_v45 = vld [vmem:[%s2141_s8 + $0xa8] sm:$0xff] }
 0x189   : > { %v1835_v40 = vadd.f32 %v2050_v38, %v1758_v59  ;;  %v2063_v38 = vld [vmem:[%s2141_s8 + $0xb0] sm:$0xff] }
 0x18b   : > { %2014 = vmatmul.msk.f32.gmra.mxu2 %vm558_vm1, %v1605_v7  ;;  %1867 = vst.msk [vmem:[%s2869_s16 + $0x48] sm:$0xff] %vm316_vm0, %v1835_v40 }
 0x18f   : > { %v1760_v54 = vpop.f32.mrf.mxu1 }
 0x190   : > { %v1761_v41 = vadd.f32 %v2851_v28, %v1760_v54 }
 0x192   : > { %v1836_v39 = vadd.f32 %v2051_v51, %v1761_v41 }
 0x193   : > { %2015 = vmatmul.msk.f32.gmra.mxu2 %vm558_vm1, %v1606_v53 }
 0x194   : > { %1868 = vst.msk [vmem:[%s2869_s16 + $0x50] sm:$0xff] %vm316_vm0, %v1836_v39  ;;  %v2066_v39 = vld [vmem:[%s2141_s8 + $0xc8] sm:$0xff] }
 0x197   : > { %v1763_v2 = vpop.f32.mrf.mxu1 }
 0x198   : > { %v1764_v42 = vadd.f32 %v2851_v28, %v1763_v2  ;;  %v2067_v2 = vld [vmem:[%s2141_s8 + $0xd0] sm:$0xff] }
 0x19a   : > { %v1837_v56 = vadd.f32 %v2052_v34, %v1764_v42 }
 0x19b   : > { %2016 = vmatmul.msk.f32.gmra.mxu2 %vm558_vm1, %v1607_v62 }
 0x19c   : > { %1869 = vst.msk [vmem:[%s2869_s16 + $0x58] sm:$0xff] %vm316_vm0, %v1837_v56 }
 0x19f   : > { %v1766_v14 = vpop.f32.mrf.mxu1 }
 0x1a0   : > { %v1767_v18 = vadd.f32 %v2851_v28, %v1766_v14 }
 0x1a2   : > { %v1838_v44 = vadd.f32 %v2053_v20, %v1767_v18 }
 0x1a3   : > { %2017 = vmatmul.msk.f32.gmra.mxu2 %vm558_vm1, %v1608_v8  ;;  %v2068_v8 = vld [vmem:[%s2141_s8 + $0xd8] sm:$0xff] }
 0x1a4   : > { %1870 = vst.msk [vmem:[%s2869_s16 + $0x60] sm:$0xff] %vm316_vm0, %v1838_v44  ;;  %v2069_v44 = vld [vmem:[%s2141_s8 + $0xe0] sm:$0xff] }
 0x1a9   : > { %v1769_v6 = vpop.f32.mrf.mxu1 }
 0x1aa   : > { %v1770_v12 = vadd.f32 %v2851_v28, %v1769_v6 }
 0x1ac   : > { %v1839_v21 = vadd.f32 %v2054_v22, %v1770_v12 }
 0x1ae   : > { %v1778_v15 = vpop.f32.mrf.mxu2  ;;  %1871 = vst.msk [vmem:[%s2869_s16 + $0x68] sm:$0xff] %vm316_vm0, %v1839_v21 }
 0x1af   : > { %v1779_v9 = vadd.f32 %v2851_v28, %v1778_v15 }
 0x1b1   : > { %v1842_v4 = vadd.f32 %v2055_v61, %v1779_v9  ;;  %v1772_v29 = vpop.f32.mrf.mxu1  ;;  %v2070_v9 = vld [vmem:[%s2141_s8 + $0xe8] sm:$0xff] }
 0x1b2   : > { %v1773_v16 = vadd.f32 %v2851_v28, %v1772_v29 }
 0x1b3   : > { %1874 = vst.msk [vmem:[%s2869_s16 + $0x80] sm:$0xff] %vm316_vm0, %v1842_v4  ;;  %v2071_v4 = vld [vmem:[%s2141_s8 + $0xf0] sm:$0xff] }
 0x1b4   : > { %v1840_v58 = vadd.f32 %v2056_v50, %v1773_v16 }
 0x1b6   : > { %v1781_v48 = vpop.f32.mrf.mxu2  ;;  %1872 = vst.msk [vmem:[%s2869_s16 + $0x70] sm:$0xff] %vm316_vm0, %v1840_v58 }
 0x1b7   : > { %v1782_v47 = vadd.f32 %v2851_v28, %v1781_v48 }
 0x1b9   : > { %v1843_v26 = vadd.f32 %v2057_v36, %v1782_v47  ;;  %v1775_v31 = vpop.f32.mrf.mxu1  ;;  %v2072_v47 = vld [vmem:[%s2141_s8 + $0xf8] sm:$0xff] }
 0x1ba   : > { %v1776_v1 = vadd.f32 %v2851_v28, %v1775_v31 }
 0x1bb   : > { %1875 = vst.msk [vmem:[%s2869_s16 + $0x88] sm:$0xff] %vm316_vm0, %v1843_v26 }
 0x1bc   : > { %v1841_v46 = vadd.f32 %v2058_v25, %v1776_v1 }
 0x1be   : > { %v1784_v35 = vpop.f32.mrf.mxu2  ;;  %1873 = vst.msk [vmem:[%s2869_s16 + $0x78] sm:$0xff] %vm316_vm0, %v1841_v46 }
 0x1bf   : > { %v1785_v7 = vadd.f32 %v2851_v28, %v1784_v35 }
 0x1c1   : > { %v1844_v33 = vadd.f32 %v2059_v32, %v1785_v7 }
 0x1c3   : > { %1876 = vst.msk [vmem:[%s2869_s16 + $0x90] sm:$0xff] %vm316_vm0, %v1844_v33 }
 0x1c6   : > { %v1787_v11 = vpop.f32.mrf.mxu2 }
 0x1c7   : > { %v1788_v52 = vadd.f32 %v2851_v28, %v1787_v11 }
 0x1c9   : > { %v1845_v43 = vadd.f32 %v2060_v37, %v1788_v52 }
 0x1cb   : > { %1877 = vst.msk [vmem:[%s2869_s16 + $0x98] sm:$0xff] %vm316_vm0, %v1845_v43 }
 0x1ce   : > { %v1790_v30 = vpop.f32.mrf.mxu2 }
 0x1cf   : > { %v1791_v10 = vadd.f32 %v2851_v28, %v1790_v30 }
 0x1d1   : > { %v1846_v60 = vadd.f32 %v2061_v55, %v1791_v10 }
 0x1d3   : > { %1878 = vst.msk [vmem:[%s2869_s16 + $0xa0] sm:$0xff] %vm316_vm0, %v1846_v60 }
 0x1d6   : > { %v1793_v17 = vpop.f32.mrf.mxu2 }
 0x1d7   : > { %v1794_v49 = vadd.f32 %v2851_v28, %v1793_v17 }
 0x1d9   : > { %v1847_v57 = vadd.f32 %v2062_v45, %v1794_v49 }
 0x1db   : > { %1879 = vst.msk [vmem:[%s2869_s16 + $0xa8] sm:$0xff] %vm316_vm0, %v1847_v57 }
 0x1de   : > { %v1796_v59 = vpop.f32.mrf.mxu2 }
 0x1df   : > { %v1797_v53 = vadd.f32 %v2851_v28, %v1796_v59 }
 0x1e1   : > { %v1848_v40 = vadd.f32 %v2063_v38, %v1797_v53 }
 0x1e3   : > { %1880 = vst.msk [vmem:[%s2869_s16 + $0xb0] sm:$0xff] %vm316_vm0, %v1848_v40 }
 0x1e6   : > { %v1799_v13 = vpop.f32.mrf.mxu2 }
 0x1e7   : > { %v1800_v5 = vadd.f32 %v2851_v28, %v1799_v13 }
 0x1e9   : > { %v1849_v63 = vadd.f32 %v2064_v23, %v1800_v5 }
 0x1eb   : > { %1881 = vst.msk [vmem:[%s2869_s16 + $0xb8] sm:$0xff] %vm316_vm0, %v1849_v63 }
 0x1ee   : > { %v1802_v19 = vpop.f32.mrf.mxu2 }
 0x1ef   : > { %v1803_v24 = vadd.f32 %v2851_v28, %v1802_v19 }
 0x1f1   : > { %v1850_v54 = vadd.f32 %v2065_v0, %v1803_v24 }
 0x1f3   : > { %1882 = vst.msk [vmem:[%s2869_s16 + $0xc0] sm:$0xff] %vm316_vm0, %v1850_v54 }
 0x1f6   : > { %v1805_v41 = vpop.f32.mrf.mxu2 }
 0x1f7   : > { %v1806_v51 = vadd.f32 %v2851_v28, %v1805_v41 }
 0x1f9   : > { %v1851_v62 = vadd.f32 %v2066_v39, %v1806_v51 }
 0x1fb   : > { %1883 = vst.msk [vmem:[%s2869_s16 + $0xc8] sm:$0xff] %vm316_vm0, %v1851_v62 }
 0x1fe   : > { %v1808_v27 = vpop.f32.mrf.mxu2 }
 0x1ff   : > { %v1809_v3 = vadd.f32 %v2851_v28, %v1808_v27 }
 0x201   : > { %v1852_v42 = vadd.f32 %v2067_v2, %v1809_v3 }
 0x203   : > { %1884 = vst.msk [vmem:[%s2869_s16 + $0xd0] sm:$0xff] %vm316_vm0, %v1852_v42 }
 0x206   : > { %v1811_v34 = vpop.f32.mrf.mxu2 }
 0x207   : > { %v1812_v56 = vadd.f32 %v2851_v28, %v1811_v34 }
 0x209   : > { %v1853_v14 = vadd.f32 %v2068_v8, %v1812_v56 }
 0x20b   : > { %1885 = vst.msk [vmem:[%s2869_s16 + $0xd8] sm:$0xff] %vm316_vm0, %v1853_v14 }
 0x20e   : > { %v1814_v18 = vpop.f32.mrf.mxu2 }
 0x20f   : > { %v1815_v20 = vadd.f32 %v2851_v28, %v1814_v18 }
 0x211   : > { %v1854_v6 = vadd.f32 %v2069_v44, %v1815_v20 }
 0x213   : > { %1886 = vst.msk [vmem:[%s2869_s16 + $0xe0] sm:$0xff] %vm316_vm0, %v1854_v6 }
 0x216   : > { %v1817_v15 = vpop.f32.mrf.mxu2 }
 0x217   : > { %v1818_v12 = vadd.f32 %v2851_v28, %v1817_v15 }
 0x219   : > { %v1855_v22 = vadd.f32 %v2070_v9, %v1818_v12 }
 0x21b   : > { %1887 = vst.msk [vmem:[%s2869_s16 + $0xe8] sm:$0xff] %vm316_vm0, %v1855_v22 }
 0x21e   : > { %v1820_v21 = vpop.f32.mrf.mxu2 }
 0x21f   : > { %v1821_v61 = vadd.f32 %v2851_v28, %v1820_v21 }
 0x221   : > { %v1856_v29 = vadd.f32 %v2071_v4, %v1821_v61 }
 0x223   : > { %1888 = vst.msk [vmem:[%s2869_s16 + $0xf0] sm:$0xff] %vm316_vm0, %v1856_v29 }
 0x226   : > { %v1823_v48 = vpop.f32.mrf.mxu2 }
 0x227   : > { %v1824_v16 = vadd.f32 %v2851_v28, %v1823_v48 }
 0x229   : > { %v1857_v50 = vadd.f32 %v2072_v47, %v1824_v16 }
 0x22b   : > { %1889 = vst.msk [vmem:[%s2869_s16 + $0xf8] sm:$0xff] %vm316_vm0, %v1857_v50 }
 0x22c PF: > { %s17_s24 = sadd.s32 1, %s2079_s24  }
 0x22d   : > { %p14_p4 = scmp.ge.s32.totalorder %s17_s24, 4  }
 0x22f   :  { %16 = sbr.rel (!%p14_p4) target bundleno = 1 (0x1), region = 80 }

</bundles_post_ra>
